<compile_context>
chip_gen: v5e
topology: v5e:2x2
jax: 0.10.0
libtpu: 0.0.40
codegen_flags: <defaults>
</compile_context>

<pallas_src>
import jax
import jax.numpy as jnp
from jax import lax
from jax.experimental import pallas as pl
from jax.experimental.pallas import tpu as pltpu

KERNEL_SIZE = 7
PAD = 3  # padding = 3 for kernel_size = 7 (as in the PyTorch module)


# ----------------------------- kernel ---------------------------------------


def spatial_attention_kernel(x_ref, w_ref, o_ref, mmax_ref, mpad_ref, cols_ref):
    # x_ref:    (1, Cc, H, W)      VMEM  -- one batch element, one channel chunk
    # w_ref:    (7, 7)             SMEM  -- conv1 weight (no bias)
    # o_ref:    (1, 1, H, W)       VMEM  -- output block (resident across the C axis)
    # mmax_ref: (H, W)             VMEM scratch -- running channel max
    # mpad_ref: (H+6, W+6)         VMEM scratch -- zero-padded max map
    # cols_ref: (7, H+6, W)        VMEM scratch -- 7 lane-shifted columns of mpad
    c = pl.program_id(1)
    H = o_ref.shape[2]
    W = o_ref.shape[3]

    # Channel max over this chunk (tree reduction; no cross-lane work).
    chunk_max = jnp.max(x_ref[0], axis=0).astype(jnp.float32)  # (H, W)

    @pl.when(c == 0)
    def _init():
        mmax_ref[...] = jnp.full_like(mmax_ref, -jnp.inf)

    # Running max across channel chunks (aligned load/store on the hot path).
    mmax_ref[...] = jnp.maximum(mmax_ref[...], chunk_max)

    @pl.when(c == pl.num_programs(1) - 1)
    def _finish():
        # Zero-pad the max map (border must be exactly 0 == conv2d zero padding).
        mpad_ref[...] = jnp.zeros_like(mpad_ref)
        mpad_ref[pl.ds(PAD, H), pl.ds(PAD, W)] = mmax_ref[...]

        # Hoist the 7 lane-direction shifts: materialize each dj-shifted column once.
        for dj in range(KERNEL_SIZE):
            cols_ref[dj] = mpad_ref[:, pl.ds(dj, W)]  # (H+6, W)

        # 49-tap conv as shifted-window MACs with 4 independent partial accumulators.
        n_part = 4
        partials = [jnp.zeros((H, W), dtype=jnp.float32) for _ in range(n_part)]
        t = 0
        for di in range(KERNEL_SIZE):
            for dj in range(KERNEL_SIZE):
                win = cols_ref[dj, pl.ds(di, H), :]            # (H, W) sublane-offset load
                partials[t % n_part] = partials[t % n_part] + w_ref[di, dj] * win
                t += 1
        acc = (partials[0] + partials[1]) + (partials[2] + partials[3])

        # Final sigmoid (EUP).
        out = 1.0 / (1.0 + jnp.exp(-acc))
        o_ref[0, 0] = out.astype(o_ref.dtype)


# ----------------------------- wrapper ---------------------------------------


def _round_up(x, m):
    return (x + m - 1) // m * m


def _padded_tile_bytes(h, w, bytes_per_elem=4):
    # VMEM layout pads the last two dims to (8, 128).
    return _round_up(h, 8) * _round_up(w, 128) * bytes_per_elem


def _pick_c_chunk(C, H, W, budget_bytes=4 << 20):
    """Largest divisor of C whose (Cc, H, W) f32 block stays under ~budget_bytes."""
    per_ch = _padded_tile_bytes(H, W)
    max_c = max(1, min(C, budget_bytes // per_ch))
    for cc in range(max_c, 0, -1):
        if C % cc == 0:
            return cc
    return 1


def _vmem_limit_bytes(c_chunk, H, W, Hp, Wp):
    x_block = c_chunk * _padded_tile_bytes(H, W)
    out_block = _padded_tile_bytes(H, W)
    scratch = (
        _padded_tile_bytes(H, W)
        + _padded_tile_bytes(Hp, Wp)
        + KERNEL_SIZE * _padded_tile_bytes(Hp, W)
    )
    total = 2 * x_block + 2 * out_block + scratch  # double-buffered in/out blocks
    total = int(total * 1.5) + (2 << 20)           # headroom for compiler internals
    # Clamp to a range that is valid on v5e (16 MiB default scoped) through v7x (64 MiB phys).
    return max(8 << 20, min(total, 32 << 20))


def spatial_attention(x, weight):
    """x: (B, C, H, W) float32 NCHW; weight: (1, 1, 7, 7) OIHW. Returns sigmoid(conv(max_c(x)))."""
    B, C, H, W = x.shape
    Hp, Wp = H + 2 * PAD, W + 2 * PAD

    c_chunk = _pick_c_chunk(C, H, W)
    num_c = C // c_chunk
    w2d = weight.reshape(KERNEL_SIZE, KERNEL_SIZE).astype(jnp.float32)

    return pl.pallas_call(
        spatial_attention_kernel,
        out_shape=jax.ShapeDtypeStruct((B, 1, H, W), x.dtype),
        grid=(B, num_c),
        in_specs=[
            pl.BlockSpec((1, c_chunk, H, W), lambda b, c: (b, c, 0, 0)),
            pl.BlockSpec(memory_space=pltpu.MemorySpace.SMEM),
        ],
        out_specs=pl.BlockSpec((1, 1, H, W), lambda b, c: (b, 0, 0, 0)),
        scratch_shapes=[
            pltpu.VMEM((H, W), jnp.float32),
            pltpu.VMEM((Hp, Wp), jnp.float32),
            pltpu.VMEM((KERNEL_SIZE, Hp, W), jnp.float32),
        ],
        compiler_params=pltpu.CompilerParams(
            dimension_semantics=("parallel", "arbitrary"),
            vmem_limit_bytes=_vmem_limit_bytes(c_chunk, H, W, Hp, Wp),
        ),
    )(x, w2d)


# ----------------------------- reference & test -------------------------------


def _reference(x, weight):
    # Pure-JAX reference matching the PyTorch forward exactly.
    m = jnp.max(x, axis=1, keepdims=True)  # (B, 1, H, W)
    y = lax.conv_general_dilated(
        m, weight,
        window_strides=(1, 1),
        padding=((PAD, PAD), (PAD, PAD)),
        dimension_numbers=("NCHW", "OIHW", "NCHW"),
    )
    return jax.nn.sigmoid(y)


if __name__ == "__main__":
    key = jax.random.PRNGKey(0)
    kx, kw = jax.random.split(key)

    B, C, H, W = 2, 4, 16, 16
    x = jax.random.normal(kx, (B, C, H, W), dtype=jnp.float32)

    # Deterministic conv weight init (PyTorch-like uniform with bound = 1/sqrt(fan_in)).
    fan_in = 1 * KERNEL_SIZE * KERNEL_SIZE
    bound = 1.0 / (fan_in ** 0.5)
    weight = jax.random.uniform(
        kw, (1, 1, KERNEL_SIZE, KERNEL_SIZE), jnp.float32, minval=-bound, maxval=bound
    )

    out = spatial_attention(x, weight)
    out = jax.block_until_ready(out)

    ref = jax.block_until_ready(_reference(x, weight))
    assert out.shape == (B, 1, H, W), out.shape
    assert jnp.allclose(out, ref, atol=1e-5, rtol=1e-5), float(jnp.max(jnp.abs(out - ref)))

    print("KERNEL_OK")
</pallas_src>

<mosaic_0001>
module attributes {stable_mosaic.version = 11 : i64} {
  func.func @spatial_attention_kernel(%arg0: i32, %arg1: i32, %arg2: memref<1x4x16x16xf32, #tpu.memory_space<vmem>>, %arg3: memref<7x7xf32, #tpu.memory_space<smem>>, %arg4: memref<1x1x16x16xf32, #tpu.memory_space<vmem>>, %arg5: memref<16x16xf32, #tpu.memory_space<vmem>>, %arg6: memref<22x22xf32, #tpu.memory_space<vmem>>, %arg7: memref<7x22x16xf32, #tpu.memory_space<vmem>>) attributes {dimension_semantics = [#tpu.dimension_semantics<parallel>, #tpu.dimension_semantics<arbitrary>], iteration_bounds = array<i64: 2, 1>, scalar_prefetch = 0 : i64, scratch_operands = 3 : i64, tpu.core_type = #tpu.core_type<tc>, window_params = [{transform_indices = @transform_0, window_bounds = array<i64: 1, 4, 16, 16>}, {transform_indices = @transform_1, window_bounds = array<i64: 7, 7>}, {transform_indices = @transform_2, window_bounds = array<i64: 1, 1, 16, 16>}]} {
    %c0 = arith.constant 0 : index
    %c0_0 = arith.constant 0 : index
    %c0_1 = arith.constant 0 : index
    %c0_2 = arith.constant 0 : index
    %0 = vector.load %arg2[%c0, %c0_0, %c0_1, %c0_2] : memref<1x4x16x16xf32, #tpu.memory_space<vmem>>, vector<1x4x16x16xf32>
    %1 = vector.shape_cast %0 : vector<1x4x16x16xf32> to vector<4x16x16xf32>
    %cst = arith.constant dense<0xFF800000> : vector<16x16xf32>
    %2 = vector.multi_reduction <maximumf>, %1, %cst [0] : vector<4x16x16xf32> to vector<16x16xf32>
    %c0_i32 = arith.constant 0 : i32
    %3 = arith.cmpi eq, %arg1, %c0_i32 : i32
    %4 = arith.extui %3 : i1 to i32
    %c0_i32_3 = arith.constant 0 : i32
    %5 = arith.cmpi ne, %4, %c0_i32_3 : i32
    scf.if %5 {
      %cst_10 = arith.constant 0xFF800000 : f32
      %12 = vector.broadcast %cst_10 : f32 to vector<16x16xf32>
      %c0_11 = arith.constant 0 : index
      %c0_12 = arith.constant 0 : index
      %13 = vector.load %arg5[%c0_11, %c0_12] : memref<16x16xf32, #tpu.memory_space<vmem>>, vector<16x16xf32>
      tpu.vector_store %arg5[%c0_11, %c0_12], %12 {strides = array<i32>} : memref<16x16xf32, #tpu.memory_space<vmem>>, vector<16x16xf32>,
    } else {
    }
    %c0_4 = arith.constant 0 : index
    %c0_5 = arith.constant 0 : index
    %6 = vector.load %arg5[%c0_4, %c0_5] : memref<16x16xf32, #tpu.memory_space<vmem>>, vector<16x16xf32>
    %7 = arith.maximumf %6, %2 : vector<16x16xf32>
    %c0_6 = arith.constant 0 : index
    %c0_7 = arith.constant 0 : index
    %8 = vector.load %arg5[%c0_6, %c0_7] : memref<16x16xf32, #tpu.memory_space<vmem>>, vector<16x16xf32>
    tpu.vector_store %arg5[%c0_6, %c0_7], %7 {strides = array<i32>} : memref<16x16xf32, #tpu.memory_space<vmem>>, vector<16x16xf32>,
    %c0_i32_8 = arith.constant 0 : i32
    %9 = arith.cmpi eq, %arg1, %c0_i32_8 : i32
    %10 = arith.extui %9 : i1 to i32
    %c0_i32_9 = arith.constant 0 : i32
    %11 = arith.cmpi ne, %10, %c0_i32_9 : i32
    scf.if %11 {
      %cst_10 = arith.constant 0.000000e+00 : f32
      %12 = vector.broadcast %cst_10 : f32 to vector<22x22xf32>
      %c0_11 = arith.constant 0 : index
      %c0_12 = arith.constant 0 : index
      %13 = vector.load %arg6[%c0_11, %c0_12] : memref<22x22xf32, #tpu.memory_space<vmem>>, vector<22x22xf32>
      tpu.vector_store %arg6[%c0_11, %c0_12], %12 {strides = array<i32>} : memref<22x22xf32, #tpu.memory_space<vmem>>, vector<22x22xf32>,
      %c0_13 = arith.constant 0 : index
      %c0_14 = arith.constant 0 : index
      %14 = vector.load %arg5[%c0_13, %c0_14] : memref<16x16xf32, #tpu.memory_space<vmem>>, vector<16x16xf32>
      %c3 = arith.constant 3 : index
      %c3_15 = arith.constant 3 : index
      %15 = vector.load %arg6[%c3, %c3_15] : memref<22x22xf32, #tpu.memory_space<vmem>>, vector<16x16xf32>
      tpu.vector_store %arg6[%c3, %c3_15], %14 {strides = array<i32>} : memref<22x22xf32, #tpu.memory_space<vmem>>, vector<16x16xf32>,
      %c0_16 = arith.constant 0 : index
      %c0_17 = arith.constant 0 : index
      %16 = vector.load %arg6[%c0_16, %c0_17] : memref<22x22xf32, #tpu.memory_space<vmem>>, vector<22x16xf32>
      %c0_18 = arith.constant 0 : index
      %c0_19 = arith.constant 0 : index
      %c0_20 = arith.constant 0 : index
      %17 = vector.load %arg7[%c0_18, %c0_19, %c0_20] : memref<7x22x16xf32, #tpu.memory_space<vmem>>, vector<1x22x16xf32>
      %18 = vector.shape_cast %17 : vector<1x22x16xf32> to vector<22x16xf32>
      %19 = vector.shape_cast %16 : vector<22x16xf32> to vector<1x22x16xf32>
      tpu.vector_store %arg7[%c0_18, %c0_19, %c0_20], %19 {strides = array<i32>} : memref<7x22x16xf32, #tpu.memory_space<vmem>>, vector<1x22x16xf32>,
      %c0_21 = arith.constant 0 : index
      %c1 = arith.constant 1 : index
      %20 = vector.load %arg6[%c0_21, %c1] : memref<22x22xf32, #tpu.memory_space<vmem>>, vector<22x16xf32>
      %c1_22 = arith.constant 1 : index
      %c0_23 = arith.constant 0 : index
      %c0_24 = arith.constant 0 : index
      %21 = vector.load %arg7[%c1_22, %c0_23, %c0_24] : memref<7x22x16xf32, #tpu.memory_space<vmem>>, vector<1x22x16xf32>
      %22 = vector.shape_cast %21 : vector<1x22x16xf32> to vector<22x16xf32>
      %23 = vector.shape_cast %20 : vector<22x16xf32> to vector<1x22x16xf32>
      tpu.vector_store %arg7[%c1_22, %c0_23, %c0_24], %23 {strides = array<i32>} : memref<7x22x16xf32, #tpu.memory_space<vmem>>, vector<1x22x16xf32>,
      %c0_25 = arith.constant 0 : index
      %c2 = arith.constant 2 : index
      %24 = vector.load %arg6[%c0_25, %c2] : memref<22x22xf32, #tpu.memory_space<vmem>>, vector<22x16xf32>
      %c2_26 = arith.constant 2 : index
      %c0_27 = arith.constant 0 : index
      %c0_28 = arith.constant 0 : index
      %25 = vector.load %arg7[%c2_26, %c0_27, %c0_28] : memref<7x22x16xf32, #tpu.memory_space<vmem>>, vector<1x22x16xf32>
      %26 = vector.shape_cast %25 : vector<1x22x16xf32> to vector<22x16xf32>
      %27 = vector.shape_cast %24 : vector<22x16xf32> to vector<1x22x16xf32>
      tpu.vector_store %arg7[%c2_26, %c0_27, %c0_28], %27 {strides = array<i32>} : memref<7x22x16xf32, #tpu.memory_space<vmem>>, vector<1x22x16xf32>,
      %c0_29 = arith.constant 0 : index
      %c3_30 = arith.constant 3 : index
      %28 = vector.load %arg6[%c0_29, %c3_30] : memref<22x22xf32, #tpu.memory_space<vmem>>, vector<22x16xf32>
      %c3_31 = arith.constant 3 : index
      %c0_32 = arith.constant 0 : index
      %c0_33 = arith.constant 0 : index
      %29 = vector.load %arg7[%c3_31, %c0_32, %c0_33] : memref<7x22x16xf32, #tpu.memory_space<vmem>>, vector<1x22x16xf32>
      %30 = vector.shape_cast %29 : vector<1x22x16xf32> to vector<22x16xf32>
      %31 = vector.shape_cast %28 : vector<22x16xf32> to vector<1x22x16xf32>
      tpu.vector_store %arg7[%c3_31, %c0_32, %c0_33], %31 {strides = array<i32>} : memref<7x22x16xf32, #tpu.memory_space<vmem>>, vector<1x22x16xf32>,
      %c0_34 = arith.constant 0 : index
      %c4 = arith.constant 4 : index
      %32 = vector.load %arg6[%c0_34, %c4] : memref<22x22xf32, #tpu.memory_space<vmem>>, vector<22x16xf32>
      %c4_35 = arith.constant 4 : index
      %c0_36 = arith.constant 0 : index
      %c0_37 = arith.constant 0 : index
      %33 = vector.load %arg7[%c4_35, %c0_36, %c0_37] : memref<7x22x16xf32, #tpu.memory_space<vmem>>, vector<1x22x16xf32>
      %34 = vector.shape_cast %33 : vector<1x22x16xf32> to vector<22x16xf32>
      %35 = vector.shape_cast %32 : vector<22x16xf32> to vector<1x22x16xf32>
      tpu.vector_store %arg7[%c4_35, %c0_36, %c0_37], %35 {strides = array<i32>} : memref<7x22x16xf32, #tpu.memory_space<vmem>>, vector<1x22x16xf32>,
      %c0_38 = arith.constant 0 : index
      %c5 = arith.constant 5 : index
      %36 = vector.load %arg6[%c0_38, %c5] : memref<22x22xf32, #tpu.memory_space<vmem>>, vector<22x16xf32>
      %c5_39 = arith.constant 5 : index
      %c0_40 = arith.constant 0 : index
      %c0_41 = arith.constant 0 : index
      %37 = vector.load %arg7[%c5_39, %c0_40, %c0_41] : memref<7x22x16xf32, #tpu.memory_space<vmem>>, vector<1x22x16xf32>
      %38 = vector.shape_cast %37 : vector<1x22x16xf32> to vector<22x16xf32>
      %39 = vector.shape_cast %36 : vector<22x16xf32> to vector<1x22x16xf32>
      tpu.vector_store %arg7[%c5_39, %c0_40, %c0_41], %39 {strides = array<i32>} : memref<7x22x16xf32, #tpu.memory_space<vmem>>, vector<1x22x16xf32>,
      %c0_42 = arith.constant 0 : index
      %c6 = arith.constant 6 : index
      %40 = vector.load %arg6[%c0_42, %c6] : memref<22x22xf32, #tpu.memory_space<vmem>>, vector<22x16xf32>
      %c6_43 = arith.constant 6 : index
      %c0_44 = arith.constant 0 : index
      %c0_45 = arith.constant 0 : index
      %41 = vector.load %arg7[%c6_43, %c0_44, %c0_45] : memref<7x22x16xf32, #tpu.memory_space<vmem>>, vector<1x22x16xf32>
      %42 = vector.shape_cast %41 : vector<1x22x16xf32> to vector<22x16xf32>
      %43 = vector.shape_cast %40 : vector<22x16xf32> to vector<1x22x16xf32>
      tpu.vector_store %arg7[%c6_43, %c0_44, %c0_45], %43 {strides = array<i32>} : memref<7x22x16xf32, #tpu.memory_space<vmem>>, vector<1x22x16xf32>,
      %cst_46 = arith.constant 0.000000e+00 : f32
      %44 = vector.broadcast %cst_46 : f32 to vector<16x16xf32>
      %cst_47 = arith.constant 0.000000e+00 : f32
      %45 = vector.broadcast %cst_47 : f32 to vector<16x16xf32>
      %cst_48 = arith.constant 0.000000e+00 : f32
      %46 = vector.broadcast %cst_48 : f32 to vector<16x16xf32>
      %cst_49 = arith.constant 0.000000e+00 : f32
      %47 = vector.broadcast %cst_49 : f32 to vector<16x16xf32>
      %c0_50 = arith.constant 0 : index
      %c0_51 = arith.constant 0 : index
      %c0_52 = arith.constant 0 : index
      %48 = vector.load %arg7[%c0_50, %c0_51, %c0_52] : memref<7x22x16xf32, #tpu.memory_space<vmem>>, vector<1x16x16xf32>
      %49 = vector.shape_cast %48 : vector<1x16x16xf32> to vector<16x16xf32>
      %c0_53 = arith.constant 0 : index
      %c0_54 = arith.constant 0 : index
      %50 = memref.load %arg3[%c0_53, %c0_54] : memref<7x7xf32, #tpu.memory_space<smem>>
      %51 = vector.broadcast %50 : f32 to vector<16x16xf32>
      %52 = arith.mulf %51, %49 : vector<16x16xf32>
      %53 = arith.addf %44, %52 : vector<16x16xf32>
      %c1_55 = arith.constant 1 : index
      %c0_56 = arith.constant 0 : index
      %c0_57 = arith.constant 0 : index
      %54 = vector.load %arg7[%c1_55, %c0_56, %c0_57] : memref<7x22x16xf32, #tpu.memory_space<vmem>>, vector<1x16x16xf32>
      %55 = vector.shape_cast %54 : vector<1x16x16xf32> to vector<16x16xf32>
      %c0_58 = arith.constant 0 : index
      %c1_59 = arith.constant 1 : index
      %56 = memref.load %arg3[%c0_58, %c1_59] : memref<7x7xf32, #tpu.memory_space<smem>>
      %57 = vector.broadcast %56 : f32 to vector<16x16xf32>
      %58 = arith.mulf %57, %55 : vector<16x16xf32>
      %59 = arith.addf %45, %58 : vector<16x16xf32>
      %c2_60 = arith.constant 2 : index
      %c0_61 = arith.constant 0 : index
      %c0_62 = arith.constant 0 : index
      %60 = vector.load %arg7[%c2_60, %c0_61, %c0_62] : memref<7x22x16xf32, #tpu.memory_space<vmem>>, vector<1x16x16xf32>
      %61 = vector.shape_cast %60 : vector<1x16x16xf32> to vector<16x16xf32>
      %c0_63 = arith.constant 0 : index
      %c2_64 = arith.constant 2 : index
      %62 = memref.load %arg3[%c0_63, %c2_64] : memref<7x7xf32, #tpu.memory_space<smem>>
      %63 = vector.broadcast %62 : f32 to vector<16x16xf32>
      %64 = arith.mulf %63, %61 : vector<16x16xf32>
      %65 = arith.addf %46, %64 : vector<16x16xf32>
      %c3_65 = arith.constant 3 : index
      %c0_66 = arith.constant 0 : index
      %c0_67 = arith.constant 0 : index
      %66 = vector.load %arg7[%c3_65, %c0_66, %c0_67] : memref<7x22x16xf32, #tpu.memory_space<vmem>>, vector<1x16x16xf32>
      %67 = vector.shape_cast %66 : vector<1x16x16xf32> to vector<16x16xf32>
      %c0_68 = arith.constant 0 : index
      %c3_69 = arith.constant 3 : index
      %68 = memref.load %arg3[%c0_68, %c3_69] : memref<7x7xf32, #tpu.memory_space<smem>>
      %69 = vector.broadcast %68 : f32 to vector<16x16xf32>
      %70 = arith.mulf %69, %67 : vector<16x16xf32>
      %71 = arith.addf %47, %70 : vector<16x16xf32>
      %c4_70 = arith.constant 4 : index
      %c0_71 = arith.constant 0 : index
      %c0_72 = arith.constant 0 : index
      %72 = vector.load %arg7[%c4_70, %c0_71, %c0_72] : memref<7x22x16xf32, #tpu.memory_space<vmem>>, vector<1x16x16xf32>
      %73 = vector.shape_cast %72 : vector<1x16x16xf32> to vector<16x16xf32>
      %c0_73 = arith.constant 0 : index
      %c4_74 = arith.constant 4 : index
      %74 = memref.load %arg3[%c0_73, %c4_74] : memref<7x7xf32, #tpu.memory_space<smem>>
      %75 = vector.broadcast %74 : f32 to vector<16x16xf32>
      %76 = arith.mulf %75, %73 : vector<16x16xf32>
      %77 = arith.addf %53, %76 : vector<16x16xf32>
      %c5_75 = arith.constant 5 : index
      %c0_76 = arith.constant 0 : index
      %c0_77 = arith.constant 0 : index
      %78 = vector.load %arg7[%c5_75, %c0_76, %c0_77] : memref<7x22x16xf32, #tpu.memory_space<vmem>>, vector<1x16x16xf32>
      %79 = vector.shape_cast %78 : vector<1x16x16xf32> to vector<16x16xf32>
      %c0_78 = arith.constant 0 : index
      %c5_79 = arith.constant 5 : index
      %80 = memref.load %arg3[%c0_78, %c5_79] : memref<7x7xf32, #tpu.memory_space<smem>>
      %81 = vector.broadcast %80 : f32 to vector<16x16xf32>
      %82 = arith.mulf %81, %79 : vector<16x16xf32>
      %83 = arith.addf %59, %82 : vector<16x16xf32>
      %c6_80 = arith.constant 6 : index
      %c0_81 = arith.constant 0 : index
      %c0_82 = arith.constant 0 : index
      %84 = vector.load %arg7[%c6_80, %c0_81, %c0_82] : memref<7x22x16xf32, #tpu.memory_space<vmem>>, vector<1x16x16xf32>
      %85 = vector.shape_cast %84 : vector<1x16x16xf32> to vector<16x16xf32>
      %c0_83 = arith.constant 0 : index
      %c6_84 = arith.constant 6 : index
      %86 = memref.load %arg3[%c0_83, %c6_84] : memref<7x7xf32, #tpu.memory_space<smem>>
      %87 = vector.broadcast %86 : f32 to vector<16x16xf32>
      %88 = arith.mulf %87, %85 : vector<16x16xf32>
      %89 = arith.addf %65, %88 : vector<16x16xf32>
      %c0_85 = arith.constant 0 : index
      %c1_86 = arith.constant 1 : index
      %c0_87 = arith.constant 0 : index
      %90 = vector.load %arg7[%c0_85, %c1_86, %c0_87] : memref<7x22x16xf32, #tpu.memory_space<vmem>>, vector<1x16x16xf32>
      %91 = vector.shape_cast %90 : vector<1x16x16xf32> to vector<16x16xf32>
      %c1_88 = arith.constant 1 : index
      %c0_89 = arith.constant 0 : index
      %92 = memref.load %arg3[%c1_88, %c0_89] : memref<7x7xf32, #tpu.memory_space<smem>>
      %93 = vector.broadcast %92 : f32 to vector<16x16xf32>
      %94 = arith.mulf %93, %91 : vector<16x16xf32>
      %95 = arith.addf %71, %94 : vector<16x16xf32>
      %c1_90 = arith.constant 1 : index
      %c1_91 = arith.constant 1 : index
      %c0_92 = arith.constant 0 : index
      %96 = vector.load %arg7[%c1_90, %c1_91, %c0_92] : memref<7x22x16xf32, #tpu.memory_space<vmem>>, vector<1x16x16xf32>
      %97 = vector.shape_cast %96 : vector<1x16x16xf32> to vector<16x16xf32>
      %c1_93 = arith.constant 1 : index
      %c1_94 = arith.constant 1 : index
      %98 = memref.load %arg3[%c1_93, %c1_94] : memref<7x7xf32, #tpu.memory_space<smem>>
      %99 = vector.broadcast %98 : f32 to vector<16x16xf32>
      %100 = arith.mulf %99, %97 : vector<16x16xf32>
      %101 = arith.addf %77, %100 : vector<16x16xf32>
      %c2_95 = arith.constant 2 : index
      %c1_96 = arith.constant 1 : index
      %c0_97 = arith.constant 0 : index
      %102 = vector.load %arg7[%c2_95, %c1_96, %c0_97] : memref<7x22x16xf32, #tpu.memory_space<vmem>>, vector<1x16x16xf32>
      %103 = vector.shape_cast %102 : vector<1x16x16xf32> to vector<16x16xf32>
      %c1_98 = arith.constant 1 : index
      %c2_99 = arith.constant 2 : index
      %104 = memref.load %arg3[%c1_98, %c2_99] : memref<7x7xf32, #tpu.memory_space<smem>>
      %105 = vector.broadcast %104 : f32 to vector<16x16xf32>
      %106 = arith.mulf %105, %103 : vector<16x16xf32>
      %107 = arith.addf %83, %106 : vector<16x16xf32>
      %c3_100 = arith.constant 3 : index
      %c1_101 = arith.constant 1 : index
      %c0_102 = arith.constant 0 : index
      %108 = vector.load %arg7[%c3_100, %c1_101, %c0_102] : memref<7x22x16xf32, #tpu.memory_space<vmem>>, vector<1x16x16xf32>
      %109 = vector.shape_cast %108 : vector<1x16x16xf32> to vector<16x16xf32>
      %c1_103 = arith.constant 1 : index
      %c3_104 = arith.constant 3 : index
      %110 = memref.load %arg3[%c1_103, %c3_104] : memref<7x7xf32, #tpu.memory_space<smem>>
      %111 = vector.broadcast %110 : f32 to vector<16x16xf32>
      %112 = arith.mulf %111, %109 : vector<16x16xf32>
      %113 = arith.addf %89, %112 : vector<16x16xf32>
      %c4_105 = arith.constant 4 : index
      %c1_106 = arith.constant 1 : index
      %c0_107 = arith.constant 0 : index
      %114 = vector.load %arg7[%c4_105, %c1_106, %c0_107] : memref<7x22x16xf32, #tpu.memory_space<vmem>>, vector<1x16x16xf32>
      %115 = vector.shape_cast %114 : vector<1x16x16xf32> to vector<16x16xf32>
      %c1_108 = arith.constant 1 : index
      %c4_109 = arith.constant 4 : index
      %116 = memref.load %arg3[%c1_108, %c4_109] : memref<7x7xf32, #tpu.memory_space<smem>>
      %117 = vector.broadcast %116 : f32 to vector<16x16xf32>
      %118 = arith.mulf %117, %115 : vector<16x16xf32>
      %119 = arith.addf %95, %118 : vector<16x16xf32>
      %c5_110 = arith.constant 5 : index
      %c1_111 = arith.constant 1 : index
      %c0_112 = arith.constant 0 : index
      %120 = vector.load %arg7[%c5_110, %c1_111, %c0_112] : memref<7x22x16xf32, #tpu.memory_space<vmem>>, vector<1x16x16xf32>
      %121 = vector.shape_cast %120 : vector<1x16x16xf32> to vector<16x16xf32>
      %c1_113 = arith.constant 1 : index
      %c5_114 = arith.constant 5 : index
      %122 = memref.load %arg3[%c1_113, %c5_114] : memref<7x7xf32, #tpu.memory_space<smem>>
      %123 = vector.broadcast %122 : f32 to vector<16x16xf32>
      %124 = arith.mulf %123, %121 : vector<16x16xf32>
      %125 = arith.addf %101, %124 : vector<16x16xf32>
      %c6_115 = arith.constant 6 : index
      %c1_116 = arith.constant 1 : index
      %c0_117 = arith.constant 0 : index
      %126 = vector.load %arg7[%c6_115, %c1_116, %c0_117] : memref<7x22x16xf32, #tpu.memory_space<vmem>>, vector<1x16x16xf32>
      %127 = vector.shape_cast %126 : vector<1x16x16xf32> to vector<16x16xf32>
      %c1_118 = arith.constant 1 : index
      %c6_119 = arith.constant 6 : index
      %128 = memref.load %arg3[%c1_118, %c6_119] : memref<7x7xf32, #tpu.memory_space<smem>>
      %129 = vector.broadcast %128 : f32 to vector<16x16xf32>
      %130 = arith.mulf %129, %127 : vector<16x16xf32>
      %131 = arith.addf %107, %130 : vector<16x16xf32>
      %c0_120 = arith.constant 0 : index
      %c2_121 = arith.constant 2 : index
      %c0_122 = arith.constant 0 : index
      %132 = vector.load %arg7[%c0_120, %c2_121, %c0_122] : memref<7x22x16xf32, #tpu.memory_space<vmem>>, vector<1x16x16xf32>
      %133 = vector.shape_cast %132 : vector<1x16x16xf32> to vector<16x16xf32>
      %c2_123 = arith.constant 2 : index
      %c0_124 = arith.constant 0 : index
      %134 = memref.load %arg3[%c2_123, %c0_124] : memref<7x7xf32, #tpu.memory_space<smem>>
      %135 = vector.broadcast %134 : f32 to vector<16x16xf32>
      %136 = arith.mulf %135, %133 : vector<16x16xf32>
      %137 = arith.addf %113, %136 : vector<16x16xf32>
      %c1_125 = arith.constant 1 : index
      %c2_126 = arith.constant 2 : index
      %c0_127 = arith.constant 0 : index
      %138 = vector.load %arg7[%c1_125, %c2_126, %c0_127] : memref<7x22x16xf32, #tpu.memory_space<vmem>>, vector<1x16x16xf32>
      %139 = vector.shape_cast %138 : vector<1x16x16xf32> to vector<16x16xf32>
      %c2_128 = arith.constant 2 : index
      %c1_129 = arith.constant 1 : index
      %140 = memref.load %arg3[%c2_128, %c1_129] : memref<7x7xf32, #tpu.memory_space<smem>>
      %141 = vector.broadcast %140 : f32 to vector<16x16xf32>
      %142 = arith.mulf %141, %139 : vector<16x16xf32>
      %143 = arith.addf %119, %142 : vector<16x16xf32>
      %c2_130 = arith.constant 2 : index
      %c2_131 = arith.constant 2 : index
      %c0_132 = arith.constant 0 : index
      %144 = vector.load %arg7[%c2_130, %c2_131, %c0_132] : memref<7x22x16xf32, #tpu.memory_space<vmem>>, vector<1x16x16xf32>
      %145 = vector.shape_cast %144 : vector<1x16x16xf32> to vector<16x16xf32>
      %c2_133 = arith.constant 2 : index
      %c2_134 = arith.constant 2 : index
      %146 = memref.load %arg3[%c2_133, %c2_134] : memref<7x7xf32, #tpu.memory_space<smem>>
      %147 = vector.broadcast %146 : f32 to vector<16x16xf32>
      %148 = arith.mulf %147, %145 : vector<16x16xf32>
      %149 = arith.addf %125, %148 : vector<16x16xf32>
      %c3_135 = arith.constant 3 : index
      %c2_136 = arith.constant 2 : index
      %c0_137 = arith.constant 0 : index
      %150 = vector.load %arg7[%c3_135, %c2_136, %c0_137] : memref<7x22x16xf32, #tpu.memory_space<vmem>>, vector<1x16x16xf32>
      %151 = vector.shape_cast %150 : vector<1x16x16xf32> to vector<16x16xf32>
      %c2_138 = arith.constant 2 : index
      %c3_139 = arith.constant 3 : index
      %152 = memref.load %arg3[%c2_138, %c3_139] : memref<7x7xf32, #tpu.memory_space<smem>>
      %153 = vector.broadcast %152 : f32 to vector<16x16xf32>
      %154 = arith.mulf %153, %151 : vector<16x16xf32>
      %155 = arith.addf %131, %154 : vector<16x16xf32>
      %c4_140 = arith.constant 4 : index
      %c2_141 = arith.constant 2 : index
      %c0_142 = arith.constant 0 : index
      %156 = vector.load %arg7[%c4_140, %c2_141, %c0_142] : memref<7x22x16xf32, #tpu.memory_space<vmem>>, vector<1x16x16xf32>
      %157 = vector.shape_cast %156 : vector<1x16x16xf32> to vector<16x16xf32>
      %c2_143 = arith.constant 2 : index
      %c4_144 = arith.constant 4 : index
      %158 = memref.load %arg3[%c2_143, %c4_144] : memref<7x7xf32, #tpu.memory_space<smem>>
      %159 = vector.broadcast %158 : f32 to vector<16x16xf32>
      %160 = arith.mulf %159, %157 : vector<16x16xf32>
      %161 = arith.addf %137, %160 : vector<16x16xf32>
      %c5_145 = arith.constant 5 : index
      %c2_146 = arith.constant 2 : index
      %c0_147 = arith.constant 0 : index
      %162 = vector.load %arg7[%c5_145, %c2_146, %c0_147] : memref<7x22x16xf32, #tpu.memory_space<vmem>>, vector<1x16x16xf32>
      %163 = vector.shape_cast %162 : vector<1x16x16xf32> to vector<16x16xf32>
      %c2_148 = arith.constant 2 : index
      %c5_149 = arith.constant 5 : index
      %164 = memref.load %arg3[%c2_148, %c5_149] : memref<7x7xf32, #tpu.memory_space<smem>>
      %165 = vector.broadcast %164 : f32 to vector<16x16xf32>
      %166 = arith.mulf %165, %163 : vector<16x16xf32>
      %167 = arith.addf %143, %166 : vector<16x16xf32>
      %c6_150 = arith.constant 6 : index
      %c2_151 = arith.constant 2 : index
      %c0_152 = arith.constant 0 : index
      %168 = vector.load %arg7[%c6_150, %c2_151, %c0_152] : memref<7x22x16xf32, #tpu.memory_space<vmem>>, vector<1x16x16xf32>
      %169 = vector.shape_cast %168 : vector<1x16x16xf32> to vector<16x16xf32>
      %c2_153 = arith.constant 2 : index
      %c6_154 = arith.constant 6 : index
      %170 = memref.load %arg3[%c2_153, %c6_154] : memref<7x7xf32, #tpu.memory_space<smem>>
      %171 = vector.broadcast %170 : f32 to vector<16x16xf32>
      %172 = arith.mulf %171, %169 : vector<16x16xf32>
      %173 = arith.addf %149, %172 : vector<16x16xf32>
      %c0_155 = arith.constant 0 : index
      %c3_156 = arith.constant 3 : index
      %c0_157 = arith.constant 0 : index
      %174 = vector.load %arg7[%c0_155, %c3_156, %c0_157] : memref<7x22x16xf32, #tpu.memory_space<vmem>>, vector<1x16x16xf32>
      %175 = vector.shape_cast %174 : vector<1x16x16xf32> to vector<16x16xf32>
      %c3_158 = arith.constant 3 : index
      %c0_159 = arith.constant 0 : index
      %176 = memref.load %arg3[%c3_158, %c0_159] : memref<7x7xf32, #tpu.memory_space<smem>>
      %177 = vector.broadcast %176 : f32 to vector<16x16xf32>
      %178 = arith.mulf %177, %175 : vector<16x16xf32>
      %179 = arith.addf %155, %178 : vector<16x16xf32>
      %c1_160 = arith.constant 1 : index
      %c3_161 = arith.constant 3 : index
      %c0_162 = arith.constant 0 : index
      %180 = vector.load %arg7[%c1_160, %c3_161, %c0_162] : memref<7x22x16xf32, #tpu.memory_space<vmem>>, vector<1x16x16xf32>
      %181 = vector.shape_cast %180 : vector<1x16x16xf32> to vector<16x16xf32>
      %c3_163 = arith.constant 3 : index
      %c1_164 = arith.constant 1 : index
      %182 = memref.load %arg3[%c3_163, %c1_164] : memref<7x7xf32, #tpu.memory_space<smem>>
      %183 = vector.broadcast %182 : f32 to vector<16x16xf32>
      %184 = arith.mulf %183, %181 : vector<16x16xf32>
      %185 = arith.addf %161, %184 : vector<16x16xf32>
      %c2_165 = arith.constant 2 : index
      %c3_166 = arith.constant 3 : index
      %c0_167 = arith.constant 0 : index
      %186 = vector.load %arg7[%c2_165, %c3_166, %c0_167] : memref<7x22x16xf32, #tpu.memory_space<vmem>>, vector<1x16x16xf32>
      %187 = vector.shape_cast %186 : vector<1x16x16xf32> to vector<16x16xf32>
      %c3_168 = arith.constant 3 : index
      %c2_169 = arith.constant 2 : index
      %188 = memref.load %arg3[%c3_168, %c2_169] : memref<7x7xf32, #tpu.memory_space<smem>>
      %189 = vector.broadcast %188 : f32 to vector<16x16xf32>
      %190 = arith.mulf %189, %187 : vector<16x16xf32>
      %191 = arith.addf %167, %190 : vector<16x16xf32>
      %c3_170 = arith.constant 3 : index
      %c3_171 = arith.constant 3 : index
      %c0_172 = arith.constant 0 : index
      %192 = vector.load %arg7[%c3_170, %c3_171, %c0_172] : memref<7x22x16xf32, #tpu.memory_space<vmem>>, vector<1x16x16xf32>
      %193 = vector.shape_cast %192 : vector<1x16x16xf32> to vector<16x16xf32>
      %c3_173 = arith.constant 3 : index
      %c3_174 = arith.constant 3 : index
      %194 = memref.load %arg3[%c3_173, %c3_174] : memref<7x7xf32, #tpu.memory_space<smem>>
      %195 = vector.broadcast %194 : f32 to vector<16x16xf32>
      %196 = arith.mulf %195, %193 : vector<16x16xf32>
      %197 = arith.addf %173, %196 : vector<16x16xf32>
      %c4_175 = arith.constant 4 : index
      %c3_176 = arith.constant 3 : index
      %c0_177 = arith.constant 0 : index
      %198 = vector.load %arg7[%c4_175, %c3_176, %c0_177] : memref<7x22x16xf32, #tpu.memory_space<vmem>>, vector<1x16x16xf32>
      %199 = vector.shape_cast %198 : vector<1x16x16xf32> to vector<16x16xf32>
      %c3_178 = arith.constant 3 : index
      %c4_179 = arith.constant 4 : index
      %200 = memref.load %arg3[%c3_178, %c4_179] : memref<7x7xf32, #tpu.memory_space<smem>>
      %201 = vector.broadcast %200 : f32 to vector<16x16xf32>
      %202 = arith.mulf %201, %199 : vector<16x16xf32>
      %203 = arith.addf %179, %202 : vector<16x16xf32>
      %c5_180 = arith.constant 5 : index
      %c3_181 = arith.constant 3 : index
      %c0_182 = arith.constant 0 : index
      %204 = vector.load %arg7[%c5_180, %c3_181, %c0_182] : memref<7x22x16xf32, #tpu.memory_space<vmem>>, vector<1x16x16xf32>
      %205 = vector.shape_cast %204 : vector<1x16x16xf32> to vector<16x16xf32>
      %c3_183 = arith.constant 3 : index
      %c5_184 = arith.constant 5 : index
      %206 = memref.load %arg3[%c3_183, %c5_184] : memref<7x7xf32, #tpu.memory_space<smem>>
      %207 = vector.broadcast %206 : f32 to vector<16x16xf32>
      %208 = arith.mulf %207, %205 : vector<16x16xf32>
      %209 = arith.addf %185, %208 : vector<16x16xf32>
      %c6_185 = arith.constant 6 : index
      %c3_186 = arith.constant 3 : index
      %c0_187 = arith.constant 0 : index
      %210 = vector.load %arg7[%c6_185, %c3_186, %c0_187] : memref<7x22x16xf32, #tpu.memory_space<vmem>>, vector<1x16x16xf32>
      %211 = vector.shape_cast %210 : vector<1x16x16xf32> to vector<16x16xf32>
      %c3_188 = arith.constant 3 : index
      %c6_189 = arith.constant 6 : index
      %212 = memref.load %arg3[%c3_188, %c6_189] : memref<7x7xf32, #tpu.memory_space<smem>>
      %213 = vector.broadcast %212 : f32 to vector<16x16xf32>
      %214 = arith.mulf %213, %211 : vector<16x16xf32>
      %215 = arith.addf %191, %214 : vector<16x16xf32>
      %c0_190 = arith.constant 0 : index
      %c4_191 = arith.constant 4 : index
      %c0_192 = arith.constant 0 : index
      %216 = vector.load %arg7[%c0_190, %c4_191, %c0_192] : memref<7x22x16xf32, #tpu.memory_space<vmem>>, vector<1x16x16xf32>
      %217 = vector.shape_cast %216 : vector<1x16x16xf32> to vector<16x16xf32>
      %c4_193 = arith.constant 4 : index
      %c0_194 = arith.constant 0 : index
      %218 = memref.load %arg3[%c4_193, %c0_194] : memref<7x7xf32, #tpu.memory_space<smem>>
      %219 = vector.broadcast %218 : f32 to vector<16x16xf32>
      %220 = arith.mulf %219, %217 : vector<16x16xf32>
      %221 = arith.addf %197, %220 : vector<16x16xf32>
      %c1_195 = arith.constant 1 : index
      %c4_196 = arith.constant 4 : index
      %c0_197 = arith.constant 0 : index
      %222 = vector.load %arg7[%c1_195, %c4_196, %c0_197] : memref<7x22x16xf32, #tpu.memory_space<vmem>>, vector<1x16x16xf32>
      %223 = vector.shape_cast %222 : vector<1x16x16xf32> to vector<16x16xf32>
      %c4_198 = arith.constant 4 : index
      %c1_199 = arith.constant 1 : index
      %224 = memref.load %arg3[%c4_198, %c1_199] : memref<7x7xf32, #tpu.memory_space<smem>>
      %225 = vector.broadcast %224 : f32 to vector<16x16xf32>
      %226 = arith.mulf %225, %223 : vector<16x16xf32>
      %227 = arith.addf %203, %226 : vector<16x16xf32>
      %c2_200 = arith.constant 2 : index
      %c4_201 = arith.constant 4 : index
      %c0_202 = arith.constant 0 : index
      %228 = vector.load %arg7[%c2_200, %c4_201, %c0_202] : memref<7x22x16xf32, #tpu.memory_space<vmem>>, vector<1x16x16xf32>
      %229 = vector.shape_cast %228 : vector<1x16x16xf32> to vector<16x16xf32>
      %c4_203 = arith.constant 4 : index
      %c2_204 = arith.constant 2 : index
      %230 = memref.load %arg3[%c4_203, %c2_204] : memref<7x7xf32, #tpu.memory_space<smem>>
      %231 = vector.broadcast %230 : f32 to vector<16x16xf32>
      %232 = arith.mulf %231, %229 : vector<16x16xf32>
      %233 = arith.addf %209, %232 : vector<16x16xf32>
      %c3_205 = arith.constant 3 : index
      %c4_206 = arith.constant 4 : index
      %c0_207 = arith.constant 0 : index
      %234 = vector.load %arg7[%c3_205, %c4_206, %c0_207] : memref<7x22x16xf32, #tpu.memory_space<vmem>>, vector<1x16x16xf32>
      %235 = vector.shape_cast %234 : vector<1x16x16xf32> to vector<16x16xf32>
      %c4_208 = arith.constant 4 : index
      %c3_209 = arith.constant 3 : index
      %236 = memref.load %arg3[%c4_208, %c3_209] : memref<7x7xf32, #tpu.memory_space<smem>>
      %237 = vector.broadcast %236 : f32 to vector<16x16xf32>
      %238 = arith.mulf %237, %235 : vector<16x16xf32>
      %239 = arith.addf %215, %238 : vector<16x16xf32>
      %c4_210 = arith.constant 4 : index
      %c4_211 = arith.constant 4 : index
      %c0_212 = arith.constant 0 : index
      %240 = vector.load %arg7[%c4_210, %c4_211, %c0_212] : memref<7x22x16xf32, #tpu.memory_space<vmem>>, vector<1x16x16xf32>
      %241 = vector.shape_cast %240 : vector<1x16x16xf32> to vector<16x16xf32>
      %c4_213 = arith.constant 4 : index
      %c4_214 = arith.constant 4 : index
      %242 = memref.load %arg3[%c4_213, %c4_214] : memref<7x7xf32, #tpu.memory_space<smem>>
      %243 = vector.broadcast %242 : f32 to vector<16x16xf32>
      %244 = arith.mulf %243, %241 : vector<16x16xf32>
      %245 = arith.addf %221, %244 : vector<16x16xf32>
      %c5_215 = arith.constant 5 : index
      %c4_216 = arith.constant 4 : index
      %c0_217 = arith.constant 0 : index
      %246 = vector.load %arg7[%c5_215, %c4_216, %c0_217] : memref<7x22x16xf32, #tpu.memory_space<vmem>>, vector<1x16x16xf32>
      %247 = vector.shape_cast %246 : vector<1x16x16xf32> to vector<16x16xf32>
      %c4_218 = arith.constant 4 : index
      %c5_219 = arith.constant 5 : index
      %248 = memref.load %arg3[%c4_218, %c5_219] : memref<7x7xf32, #tpu.memory_space<smem>>
      %249 = vector.broadcast %248 : f32 to vector<16x16xf32>
      %250 = arith.mulf %249, %247 : vector<16x16xf32>
      %251 = arith.addf %227, %250 : vector<16x16xf32>
      %c6_220 = arith.constant 6 : index
      %c4_221 = arith.constant 4 : index
      %c0_222 = arith.constant 0 : index
      %252 = vector.load %arg7[%c6_220, %c4_221, %c0_222] : memref<7x22x16xf32, #tpu.memory_space<vmem>>, vector<1x16x16xf32>
      %253 = vector.shape_cast %252 : vector<1x16x16xf32> to vector<16x16xf32>
      %c4_223 = arith.constant 4 : index
      %c6_224 = arith.constant 6 : index
      %254 = memref.load %arg3[%c4_223, %c6_224] : memref<7x7xf32, #tpu.memory_space<smem>>
      %255 = vector.broadcast %254 : f32 to vector<16x16xf32>
      %256 = arith.mulf %255, %253 : vector<16x16xf32>
      %257 = arith.addf %233, %256 : vector<16x16xf32>
      %c0_225 = arith.constant 0 : index
      %c5_226 = arith.constant 5 : index
      %c0_227 = arith.constant 0 : index
      %258 = vector.load %arg7[%c0_225, %c5_226, %c0_227] : memref<7x22x16xf32, #tpu.memory_space<vmem>>, vector<1x16x16xf32>
      %259 = vector.shape_cast %258 : vector<1x16x16xf32> to vector<16x16xf32>
      %c5_228 = arith.constant 5 : index
      %c0_229 = arith.constant 0 : index
      %260 = memref.load %arg3[%c5_228, %c0_229] : memref<7x7xf32, #tpu.memory_space<smem>>
      %261 = vector.broadcast %260 : f32 to vector<16x16xf32>
      %262 = arith.mulf %261, %259 : vector<16x16xf32>
      %263 = arith.addf %239, %262 : vector<16x16xf32>
      %c1_230 = arith.constant 1 : index
      %c5_231 = arith.constant 5 : index
      %c0_232 = arith.constant 0 : index
      %264 = vector.load %arg7[%c1_230, %c5_231, %c0_232] : memref<7x22x16xf32, #tpu.memory_space<vmem>>, vector<1x16x16xf32>
      %265 = vector.shape_cast %264 : vector<1x16x16xf32> to vector<16x16xf32>
      %c5_233 = arith.constant 5 : index
      %c1_234 = arith.constant 1 : index
      %266 = memref.load %arg3[%c5_233, %c1_234] : memref<7x7xf32, #tpu.memory_space<smem>>
      %267 = vector.broadcast %266 : f32 to vector<16x16xf32>
      %268 = arith.mulf %267, %265 : vector<16x16xf32>
      %269 = arith.addf %245, %268 : vector<16x16xf32>
      %c2_235 = arith.constant 2 : index
      %c5_236 = arith.constant 5 : index
      %c0_237 = arith.constant 0 : index
      %270 = vector.load %arg7[%c2_235, %c5_236, %c0_237] : memref<7x22x16xf32, #tpu.memory_space<vmem>>, vector<1x16x16xf32>
      %271 = vector.shape_cast %270 : vector<1x16x16xf32> to vector<16x16xf32>
      %c5_238 = arith.constant 5 : index
      %c2_239 = arith.constant 2 : index
      %272 = memref.load %arg3[%c5_238, %c2_239] : memref<7x7xf32, #tpu.memory_space<smem>>
      %273 = vector.broadcast %272 : f32 to vector<16x16xf32>
      %274 = arith.mulf %273, %271 : vector<16x16xf32>
      %275 = arith.addf %251, %274 : vector<16x16xf32>
      %c3_240 = arith.constant 3 : index
      %c5_241 = arith.constant 5 : index
      %c0_242 = arith.constant 0 : index
      %276 = vector.load %arg7[%c3_240, %c5_241, %c0_242] : memref<7x22x16xf32, #tpu.memory_space<vmem>>, vector<1x16x16xf32>
      %277 = vector.shape_cast %276 : vector<1x16x16xf32> to vector<16x16xf32>
      %c5_243 = arith.constant 5 : index
      %c3_244 = arith.constant 3 : index
      %278 = memref.load %arg3[%c5_243, %c3_244] : memref<7x7xf32, #tpu.memory_space<smem>>
      %279 = vector.broadcast %278 : f32 to vector<16x16xf32>
      %280 = arith.mulf %279, %277 : vector<16x16xf32>
      %281 = arith.addf %257, %280 : vector<16x16xf32>
      %c4_245 = arith.constant 4 : index
      %c5_246 = arith.constant 5 : index
      %c0_247 = arith.constant 0 : index
      %282 = vector.load %arg7[%c4_245, %c5_246, %c0_247] : memref<7x22x16xf32, #tpu.memory_space<vmem>>, vector<1x16x16xf32>
      %283 = vector.shape_cast %282 : vector<1x16x16xf32> to vector<16x16xf32>
      %c5_248 = arith.constant 5 : index
      %c4_249 = arith.constant 4 : index
      %284 = memref.load %arg3[%c5_248, %c4_249] : memref<7x7xf32, #tpu.memory_space<smem>>
      %285 = vector.broadcast %284 : f32 to vector<16x16xf32>
      %286 = arith.mulf %285, %283 : vector<16x16xf32>
      %287 = arith.addf %263, %286 : vector<16x16xf32>
      %c5_250 = arith.constant 5 : index
      %c5_251 = arith.constant 5 : index
      %c0_252 = arith.constant 0 : index
      %288 = vector.load %arg7[%c5_250, %c5_251, %c0_252] : memref<7x22x16xf32, #tpu.memory_space<vmem>>, vector<1x16x16xf32>
      %289 = vector.shape_cast %288 : vector<1x16x16xf32> to vector<16x16xf32>
      %c5_253 = arith.constant 5 : index
      %c5_254 = arith.constant 5 : index
      %290 = memref.load %arg3[%c5_253, %c5_254] : memref<7x7xf32, #tpu.memory_space<smem>>
      %291 = vector.broadcast %290 : f32 to vector<16x16xf32>
      %292 = arith.mulf %291, %289 : vector<16x16xf32>
      %293 = arith.addf %269, %292 : vector<16x16xf32>
      %c6_255 = arith.constant 6 : index
      %c5_256 = arith.constant 5 : index
      %c0_257 = arith.constant 0 : index
      %294 = vector.load %arg7[%c6_255, %c5_256, %c0_257] : memref<7x22x16xf32, #tpu.memory_space<vmem>>, vector<1x16x16xf32>
      %295 = vector.shape_cast %294 : vector<1x16x16xf32> to vector<16x16xf32>
      %c5_258 = arith.constant 5 : index
      %c6_259 = arith.constant 6 : index
      %296 = memref.load %arg3[%c5_258, %c6_259] : memref<7x7xf32, #tpu.memory_space<smem>>
      %297 = vector.broadcast %296 : f32 to vector<16x16xf32>
      %298 = arith.mulf %297, %295 : vector<16x16xf32>
      %299 = arith.addf %275, %298 : vector<16x16xf32>
      %c0_260 = arith.constant 0 : index
      %c6_261 = arith.constant 6 : index
      %c0_262 = arith.constant 0 : index
      %300 = vector.load %arg7[%c0_260, %c6_261, %c0_262] : memref<7x22x16xf32, #tpu.memory_space<vmem>>, vector<1x16x16xf32>
      %301 = vector.shape_cast %300 : vector<1x16x16xf32> to vector<16x16xf32>
      %c6_263 = arith.constant 6 : index
      %c0_264 = arith.constant 0 : index
      %302 = memref.load %arg3[%c6_263, %c0_264] : memref<7x7xf32, #tpu.memory_space<smem>>
      %303 = vector.broadcast %302 : f32 to vector<16x16xf32>
      %304 = arith.mulf %303, %301 : vector<16x16xf32>
      %305 = arith.addf %281, %304 : vector<16x16xf32>
      %c1_265 = arith.constant 1 : index
      %c6_266 = arith.constant 6 : index
      %c0_267 = arith.constant 0 : index
      %306 = vector.load %arg7[%c1_265, %c6_266, %c0_267] : memref<7x22x16xf32, #tpu.memory_space<vmem>>, vector<1x16x16xf32>
      %307 = vector.shape_cast %306 : vector<1x16x16xf32> to vector<16x16xf32>
      %c6_268 = arith.constant 6 : index
      %c1_269 = arith.constant 1 : index
      %308 = memref.load %arg3[%c6_268, %c1_269] : memref<7x7xf32, #tpu.memory_space<smem>>
      %309 = vector.broadcast %308 : f32 to vector<16x16xf32>
      %310 = arith.mulf %309, %307 : vector<16x16xf32>
      %311 = arith.addf %287, %310 : vector<16x16xf32>
      %c2_270 = arith.constant 2 : index
      %c6_271 = arith.constant 6 : index
      %c0_272 = arith.constant 0 : index
      %312 = vector.load %arg7[%c2_270, %c6_271, %c0_272] : memref<7x22x16xf32, #tpu.memory_space<vmem>>, vector<1x16x16xf32>
      %313 = vector.shape_cast %312 : vector<1x16x16xf32> to vector<16x16xf32>
      %c6_273 = arith.constant 6 : index
      %c2_274 = arith.constant 2 : index
      %314 = memref.load %arg3[%c6_273, %c2_274] : memref<7x7xf32, #tpu.memory_space<smem>>
      %315 = vector.broadcast %314 : f32 to vector<16x16xf32>
      %316 = arith.mulf %315, %313 : vector<16x16xf32>
      %317 = arith.addf %293, %316 : vector<16x16xf32>
      %c3_275 = arith.constant 3 : index
      %c6_276 = arith.constant 6 : index
      %c0_277 = arith.constant 0 : index
      %318 = vector.load %arg7[%c3_275, %c6_276, %c0_277] : memref<7x22x16xf32, #tpu.memory_space<vmem>>, vector<1x16x16xf32>
      %319 = vector.shape_cast %318 : vector<1x16x16xf32> to vector<16x16xf32>
      %c6_278 = arith.constant 6 : index
      %c3_279 = arith.constant 3 : index
      %320 = memref.load %arg3[%c6_278, %c3_279] : memref<7x7xf32, #tpu.memory_space<smem>>
      %321 = vector.broadcast %320 : f32 to vector<16x16xf32>
      %322 = arith.mulf %321, %319 : vector<16x16xf32>
      %323 = arith.addf %299, %322 : vector<16x16xf32>
      %c4_280 = arith.constant 4 : index
      %c6_281 = arith.constant 6 : index
      %c0_282 = arith.constant 0 : index
      %324 = vector.load %arg7[%c4_280, %c6_281, %c0_282] : memref<7x22x16xf32, #tpu.memory_space<vmem>>, vector<1x16x16xf32>
      %325 = vector.shape_cast %324 : vector<1x16x16xf32> to vector<16x16xf32>
      %c6_283 = arith.constant 6 : index
      %c4_284 = arith.constant 4 : index
      %326 = memref.load %arg3[%c6_283, %c4_284] : memref<7x7xf32, #tpu.memory_space<smem>>
      %327 = vector.broadcast %326 : f32 to vector<16x16xf32>
      %328 = arith.mulf %327, %325 : vector<16x16xf32>
      %329 = arith.addf %305, %328 : vector<16x16xf32>
      %c5_285 = arith.constant 5 : index
      %c6_286 = arith.constant 6 : index
      %c0_287 = arith.constant 0 : index
      %330 = vector.load %arg7[%c5_285, %c6_286, %c0_287] : memref<7x22x16xf32, #tpu.memory_space<vmem>>, vector<1x16x16xf32>
      %331 = vector.shape_cast %330 : vector<1x16x16xf32> to vector<16x16xf32>
      %c6_288 = arith.constant 6 : index
      %c5_289 = arith.constant 5 : index
      %332 = memref.load %arg3[%c6_288, %c5_289] : memref<7x7xf32, #tpu.memory_space<smem>>
      %333 = vector.broadcast %332 : f32 to vector<16x16xf32>
      %334 = arith.mulf %333, %331 : vector<16x16xf32>
      %335 = arith.addf %311, %334 : vector<16x16xf32>
      %c6_290 = arith.constant 6 : index
      %c6_291 = arith.constant 6 : index
      %c0_292 = arith.constant 0 : index
      %336 = vector.load %arg7[%c6_290, %c6_291, %c0_292] : memref<7x22x16xf32, #tpu.memory_space<vmem>>, vector<1x16x16xf32>
      %337 = vector.shape_cast %336 : vector<1x16x16xf32> to vector<16x16xf32>
      %c6_293 = arith.constant 6 : index
      %c6_294 = arith.constant 6 : index
      %338 = memref.load %arg3[%c6_293, %c6_294] : memref<7x7xf32, #tpu.memory_space<smem>>
      %339 = vector.broadcast %338 : f32 to vector<16x16xf32>
      %340 = arith.mulf %339, %337 : vector<16x16xf32>
      %341 = arith.addf %317, %340 : vector<16x16xf32>
      %342 = arith.addf %341, %323 : vector<16x16xf32>
      %343 = arith.addf %329, %335 : vector<16x16xf32>
      %344 = arith.addf %342, %343 : vector<16x16xf32>
      %cst_295 = arith.constant 0.000000e+00 : f32
      %345 = vector.broadcast %cst_295 : f32 to vector<16x16xf32>
      %346 = arith.subf %345, %344 : vector<16x16xf32>
      %347 = math.exp %346 : vector<16x16xf32>
      %cst_296 = arith.constant 1.000000e+00 : f32
      %348 = vector.broadcast %cst_296 : f32 to vector<16x16xf32>
      %349 = arith.addf %348, %347 : vector<16x16xf32>
      %cst_297 = arith.constant 1.000000e+00 : f32
      %350 = vector.broadcast %cst_297 : f32 to vector<16x16xf32>
      %351 = arith.divf %350, %349 : vector<16x16xf32>
      %c0_298 = arith.constant 0 : index
      %c0_299 = arith.constant 0 : index
      %c0_300 = arith.constant 0 : index
      %c0_301 = arith.constant 0 : index
      %352 = vector.load %arg4[%c0_298, %c0_299, %c0_300, %c0_301] : memref<1x1x16x16xf32, #tpu.memory_space<vmem>>, vector<1x1x16x16xf32>
      %353 = vector.shape_cast %352 : vector<1x1x16x16xf32> to vector<16x16xf32>
      %354 = vector.shape_cast %351 : vector<16x16xf32> to vector<1x1x16x16xf32>
      tpu.vector_store %arg4[%c0_298, %c0_299, %c0_300, %c0_301], %354 {strides = array<i32>} : memref<1x1x16x16xf32, #tpu.memory_space<vmem>>, vector<1x1x16x16xf32>,
    } else {
    }
    return
  }
  func.func @transform_0(%arg0: i32, %arg1: i32) -> (i32, i32, i32, i32) {
    %c0_i32 = arith.constant 0 : i32
    %c0_i32_0 = arith.constant 0 : i32
    %c0_i32_1 = arith.constant 0 : i32
    return %arg0, %arg1, %c0_i32, %c0_i32_0 : i32, i32, i32, i32
  }
  func.func @transform_1(%arg0: i32, %arg1: i32) -> (i32, i32) {
    %c0_i32 = arith.constant 0 : i32
    %c0_i32_0 = arith.constant 0 : i32
    %c0_i32_1 = arith.constant 0 : i32
    return %c0_i32, %c0_i32_0 : i32, i32
  }
  func.func @transform_2(%arg0: i32, %arg1: i32) -> (i32, i32, i32, i32) {
    %c0_i32 = arith.constant 0 : i32
    %c0_i32_0 = arith.constant 0 : i32
    %c0_i32_1 = arith.constant 0 : i32
    %c0_i32_2 = arith.constant 0 : i32
    return %arg0, %c0_i32, %c0_i32_0, %c0_i32_1 : i32, i32, i32, i32
  }
}

</mosaic_0001>

<bundles_post_ra>
// kernel: tpu_custom_call.1
= control target key start
LH: loop header
LB: loop body
LE: loop exit
PB: predicated region body
PF: predicated region fallthrough
CT: control target
= control target key end

     0   :  { %s1864_s0 = inlined_call_operand.hbm [shape: f32[2,4,16,16], index: 0, kind: input, shape index: {}]   ;;  %s1865_s1 = inlined_call_operand.hbm [shape: f32[7,7], index: 1, kind: input, shape index: {}]   ;;  %s1866_s2 = inlined_call_operand.hbm [shape: f32[2,1,16,16], index: 2, kind: output, shape index: {}]  }
   0x1   :  { %1928 = sst [smem:[#allocation48_spill]] %s1864_s0 }
   0x2   :  { %1929 = sst [smem:[#allocation49_spill]] %s1865_s1 }
   0x3   :  { %1930 = sst [smem:[#allocation50_spill]] %s1866_s2 }
   0x4   :  { %7 = vsyncpa [#allocation6], 0 }
   0x5   :  { %9 = vsyncpa [#allocation6 + $0x1], 0 }
   0x6   :  { %10 = vsyncpa [#allocation8], 0 }
   0x7   :  { %11 = vsyncpa [#allocation7], 0 }
   0x8   :  { %13 = vsyncpa [#allocation7 + $0x1], 0  ;;  %s1246_s9 = smov 0   ;;  %s1248_s10 = smov 0  }
   0x9   :  { %s1250_s11 = smov 0   ;;  %s1252_s12 = smov 0  }
   0xa   :  { %s1254_s13 = smov 0   ;;  %s1256_s14 = smov 0  }
   0xb LB: > { %1931 = sst [smem:[#allocation14_spill]] %s1195_s9  ;;  %s923_s15 = sadd.s32 4294967295, %s1215_s14   ;;  %s1215_s14 = sphi %s1256_s14, %s19_s14   ;;  %s1211_s13 = sphi %s1254_s13, %s2059_s13   ;;  %s1207_s12 = sphi %s1252_s12, %s2058_s12   ;;  %s1203_s11 = sphi %s1250_s11, %s2057_s11   ;;  %s1199_s10 = sphi %s1248_s10, %s2056_s10   ;;  %s1195_s9 = sphi %s1246_s9, %s2055_s9  }
   0xc   : > { %1932 = sst [smem:[#allocation15_spill]] %s1199_s10  ;;  %s924_s16 = sadd.s32 4294967294, %s1215_s14  }
   0xd   : > { %1933 = sst [smem:[#allocation16_spill]] %s1203_s11  ;;  %s40_s17 = sadd.s32 1, %s1203_s11 }
   0xe   : > { %1934 = sst [smem:[#allocation17_spill]] %s1207_s12  ;;  %p47_p0 = scmp.ne.s32.totalorder %s1203_s11, %s1199_s10 }
   0xf   : > { %1935 = sst [smem:[#allocation18_spill]] %s1211_s13  ;;  %p48_p1 = scmp.eq.s32.totalorder %s1215_s14, 0 }
  0x10   : > { %1936 = sst [smem:[#allocation19_spill]] %s1215_s14  ;;  %p53_p2 = scmp.ne.s32.totalorder %s1199_s10, %s1195_s9 }
  0x11   : > { %p1284_p3 = scmp.eq.s32.totalorder %s923_s15, 0  ;;  %p98_p4 = scmp.eq.s32.totalorder %s923_s15, 1 }
  0x12   : > { %p1288_p5 = por %p48_p1, %p47_p0  ;;  %p104_p6 = scmp.eq.s32.totalorder %s924_s16, 1 }
  0x13   : > { %p1294_p7 = por %p1284_p3, %p53_p2  ;;  %p1298_p8 = por %p98_p4, %p47_p0 }
  0x14   : > { %p1302_p9 = por %p104_p6, %p53_p2  ;;  %p925_p10 = scmp.ge.s32.totalorder %s1215_s14, 1 }
  0x15   : > { %s1940_s21 = scalar_select %p1298_p8, 1, 0 }
  0x16   : > { %s1942_s22 = scalar_select %p1302_p9, 1, 0 }
  0x17   : > { %1941 = sst [smem:[#allocation20_spill]] %s1940_s21  ;;  %p111_p11 = scmp.lt.s32.totalorder %s1215_s14, 3 }
  0x18   : > { %1943 = sst [smem:[#allocation21_spill]] %s1942_s22  ;;  %p927_p13 = scmp.ge.s32.totalorder %s1215_s14, 2 }
  0x19   : > { %s1944_s1 = sld [smem:[#allocation49_spill]]  ;;  %p1311_p12 = pnand %p925_p10, %p111_p11 }
  0x1a   : > { %p1011_p0 = scmp.lt.s32.totalorder %s1215_s14, 2  ;;  %s31_s28 = sadd.s32 1, %s1211_s13 }
  0x1b   : > { %p998_p1 = pneg %p1311_p12  ;;  %p33_p6 = scmp.ge.s32.totalorder %s31_s28, 2 }
  0x1c   : > { %p1321_p2 = pnand %p1011_p0, %p1288_p5  ;;  %s134_s29 = sand.u32 1, %s1203_s11  }
  0x1d   : > { %p999_p4 = pnand %p998_p1, %p1284_p3  ;;  %s1217_s30 = smov [#allocation9]  }
  0x1e   : > { %s2061_s28 = smov (%p33_p6, %s31_s28), 0  ;;  %s928_s3 = sshll.u32 %s134_s29, 6 }
  0x1f   : > { %s123_s25 = sshll.u32 %s1944_s1, 4  ;;  %1947 = sst [smem:[#allocation22_spill]] %s2061_s28  ;;  %s124_s25 = int_to_ptr.hbm [resolvable:$true] %s123_s25 }
  0x20   : > { %1001 = dma.hbm_to_smem (!%p999_p4), %s124_s25, 128, %s1217_s30, [#allocation8]  }
  0x21   : > { %s35_s4 = ssub.s32 %s1211_s13, %s2061_s28  ;;  %s988_s5 = sshll.u32 %s1211_s13, 6 }
  0x22   : > { %p38_p10 = scmp.eq.s32.totalorder %s35_s4, 0  ;;  %s1948_s0 = sld [smem:[#allocation48_spill]] }
  0x23   : > { %s138_s15 = scalar_lea.vmem [#allocation5], %s928_s3  ;;  %s135_s24 = scalar_lea.sflag [#allocation6], %s134_s29 }
  0x24   : > { %s149_s16 = sshll.u32 %s138_s15, 4  ;;  %s1218_s25 = smov 128   ;;  %s150_s16 = int_to_ptr.vmem [resolvable:$true] %s149_s16 }
  0x25   : > { %s1340_s19 = scalar_select %p38_p10, %s1203_s11, %s40_s17  }
  0x26   : > { %s1219_s30 = smov 8   ;;  %161 = sbr.rel (%p1311_p12) target bundleno = 432 (0x1b0), region = 28 }
  0x27   : > { %1949 = sst [smem:[#allocation23_spill]] %s1340_s19 }
  0x28   : > { %s146_s8 = scalar_lea.hbm %s1948_s0, %s988_s5 }
  0x29   : > { %s147_s23 = sshll.u32 %s146_s8, 4  ;;  %s148_s23 = int_to_ptr.hbm [resolvable:$true] %s147_s23 }
  0x2a   : > { %1005 = dma.hbm_to_vmem [thread:$0]  (!%p1321_p2), %s148_s23, 1024, %s150_s16, %s135_s24, %s1218_s25, %s1218_s25, %s1219_s30  }
  0x2b   : > { %s1347_s4 = sand.u32 1, %s1199_s10  }
  0x2c   : > { %1950 = sst [smem:[#allocation24_spill]] %s1347_s4  ;;  %s932_s3 = sshll.u32 %s1347_s4, 6 }
  0x2d   : > { %s164_s17 = scalar_lea.sflag [#allocation6], %s1347_s4  ;;  %s167_s5 = scalar_lea.vmem [#allocation5], %s932_s3 }
  0x2e   : > { %1182 = dma.done.wait (%p1294_p7), %s164_s17, 1024  }
  0x2f   : > { %1184 = vsyncadd (%p1294_p7), %s164_s17, 4294966272 }
  0x30   : > { %1186 = dma.done.wait (%p1284_p3), [#allocation8], 128  }
  0x31   : > { %1188 = vsyncadd (%p1284_p3), [#allocation8], 4294967168 }
  0x32   : > { %178 = sfence }
  0x33   : > { %v196_v0 = vld [vmem:[%s167_s5] sm:$0xff]  ;;  %v198_v1 = vld [vmem:[%s167_s5 + $0x10] sm:$0xff]  ;;  %vm204_vm0 = vcmask 130048   ;;  %v1220_v7 = vmov -inf   ;;  %v197_v8 = vld [vmem:[%s167_s5 + $0x8] sm:$0xff]  ;;  %vm234_vm1 = vcmask 179200  }
  0x34   : > { %v200_v2 = vld [vmem:[%s167_s5 + $0x20] sm:$0xff]  ;;  %v202_v3 = vld [vmem:[%s167_s5 + $0x30] sm:$0xff]  ;;  %v205_v4 = vsel %vm204_vm0, %v196_v0, -inf  ;;  %v206_v5 = vsel %vm204_vm0, %v198_v1, -inf  ;;  %223 = vst.msk [vmem:[#allocation2] sm:$0xff] %vm204_vm0, %v1220_v7  ;;  %v199_v11 = vld [vmem:[%s167_s5 + $0x18] sm:$0xff] }
  0x35   : > { %v207_v6 = vsel %vm204_vm0, %v200_v2, -inf  ;;  %v209_v10 = vsel %vm204_vm0, %v202_v3, -inf  ;;  %224 = vst.msk [vmem:[#allocation2 + $0x8] sm:$0xff] %vm204_vm0, %v1220_v7  ;;  %v201_v12 = vld [vmem:[%s167_s5 + $0x28] sm:$0xff]  ;;  %v203_v13 = vld [vmem:[%s167_s5 + $0x38] sm:$0xff]  ;;  %v212_v14 = vsel %vm204_vm0, %v197_v8, -inf }
  0x36   : > { %v208_v9 = vmax.f32 %v205_v4, %v207_v6  ;;  %v210_v15 = vmax.f32 %v206_v5, %v209_v10  ;;  %v213_v16 = vsel %vm204_vm0, %v199_v11, -inf  ;;  %v214_v17 = vsel %vm204_vm0, %v201_v12, -inf  ;;  %s1222_s18 = smov 3   ;;  %s1223_s20 = smov 124  }
  0x37   : > { %v216_v18 = vsel %vm204_vm0, %v203_v13, -inf  ;;  %v215_v19 = vmax.f32 %v212_v14, %v214_v17  ;;  %v1221_v22 = vmov 0.0   ;;  %vm237_vm2 = vcmask 177152   ;;  %s1224_s26 = smov 127   ;;  %s1225_s27 = smov 126  }
  0x38   : > { %v217_v20 = vmax.f32 %v213_v16, %v216_v18  ;;  %v211_v21 = vmax.f32 %v208_v9, %v210_v15  ;;  %235 = vst.msk [vmem:[#allocation3] sm:$0xff] %vm234_vm1, %v1221_v22  ;;  %vm249_vm3 = vcmask 154648   ;;  %vm257_vm4 = vcmask 128000   ;;  %s1226_s29 = smov 125   ;;  %s1227_s6 = smov 123  }
  0x39   : > { %236 = vst.msk [vmem:[#allocation3 + $0x8] sm:$0xff] %vm234_vm1, %v1221_v22  ;;  %s1228_s7 = smov 122   ;;  %s1378_s8 = sld [smem:[#allocation9]] }
  0x3a   : > { %v218_v23 = vmax.f32 %v215_v19, %v217_v20  ;;  %238 = vst.msk [vmem:[#allocation3 + $0x10] sm:$0x3f] %vm237_vm2, %v1221_v22  ;;  %s1380_s15 = sld [smem:[#allocation9 + $0x80]] }
  0x3b   : > { %v225_v24 = vld [vmem:[#allocation2] sm:$0xff]  ;;  %s1382_s16 = sld [smem:[#allocation9 + $0x100]] }
  0x3c   : > { %v227_v25 = vmax.f32 %v225_v24, %v211_v21  ;;  %v226_v26 = vld [vmem:[#allocation2 + $0x8] sm:$0xff]  ;;  %s1384_s23 = sld [smem:[#allocation9 + $0x180]] }
  0x3d   : > { %v228_v27 = vmax.f32 %v226_v26, %v218_v23  ;;  %s1386_s24 = sld [smem:[#allocation9 + $0x200]] }
  0x3e   : > { %229 = vst.msk [vmem:[#allocation2] sm:$0xff] %vm204_vm0, %v227_v25  ;;  %s1388_s25 = sld [smem:[#allocation9 + $0x280]] }
  0x3f   : > { %230 = vst.msk [vmem:[#allocation2 + $0x8] sm:$0xff] %vm204_vm0, %v228_v27  ;;  %s1390_s30 = sld [smem:[#allocation9 + $0x300]]  ;;  %v376_v51 = vstv %s1378_s8 }
  0x40   : > { %s1392_s3 = sld [smem:[#allocation9 + $0x1]]  ;;  %v432_v52 = vstv %s1380_s15 }
  0x41   : > { %s1394_s17 = sld [smem:[#allocation9 + $0x81]]  ;;  %v488_v57 = vstv %s1382_s16 }
  0x42   : > { %s1396_s5 = sld [smem:[#allocation9 + $0x101]]  ;;  %v544_v58 = vstv %s1384_s23 }
  0x43   : > { %s1413_s0 = sld [smem:[#allocation9 + $0x84]]  ;;  %v600_v59 = vstv %s1386_s24 }
  0x44   : > { %s1416_s1 = sld [smem:[#allocation9 + $0x104]]  ;;  %v656_v60 = vstv %s1388_s25 }
  0x45   : > { %v239_v28 = vld [vmem:[#allocation2] sm:$0xff]  ;;  %1951 = sst [smem:[#allocation25_spill]] %s1390_s30  ;;  %v1905_v2 = vstv %s1390_s30 }
  0x46   : > { %243 = vrot.lane.b32.xlu0 %v239_v28, %s1222_s18  ;;  %v240_v29 = vld [vmem:[#allocation2 + $0x8] sm:$0xff]  ;;  %s1418_s28 = sld [smem:[#allocation9 + $0x184]]  ;;  %v384_v3 = vstv %s1392_s3 }
  0x47   : > { %s1420_s13 = sld [smem:[#allocation9 + $0x204]]  ;;  %v440_v20 = vstv %s1394_s17 }
  0x48   : > { %s1422_s19 = sld [smem:[#allocation9 + $0x284]]  ;;  %v496_v21 = vstv %s1396_s5 }
  0x49   : > { %s1424_s11 = sld [smem:[#allocation9 + $0x304]] }
  0x4a   : > { %1955 = sst [smem:[#allocation29_spill]] %s1416_s1 }
  0x4b   : > { %s1426_s10 = sld [smem:[#allocation9 + $0x6]] }
  0x4c   : > { %s1429_s14 = sld [smem:[#allocation9 + $0x82]] }
  0x4d   : > { %1956 = sst [smem:[#allocation30_spill]] %s1420_s13 }
  0x4e   : > { %245 = vrot.lane.b32.xlu0 %v240_v29, %s1222_s18  ;;  %s1398_s18 = sld [smem:[#allocation9 + $0x181]] }
  0x4f   : > { %1957 = sst [smem:[#allocation31_spill]] %s1422_s19 }
  0x50   : > { %1958 = sst [smem:[#allocation32_spill]] %s1424_s11 }
  0x51   : > { %1959 = sst [smem:[#allocation33_spill]] %s1426_s10 }
  0x52   : > { %1960 = sst [smem:[#allocation34_spill]] %s1429_s14 }
  0x53   : > { %s1431_s22 = sld [smem:[#allocation9 + $0x102]] }
  0x54   : > { %s1434_s9 = sld [smem:[#allocation9 + $0x182]]  ;;  %v552_v25 = vstv %s1398_s18 }
  0x55   : > { %s1436_s21 = sld [smem:[#allocation9 + $0x202]] }
  0x56   : > { %s1438_s2 = sld [smem:[#allocation9 + $0x282]] }
  0x57   : > { %s1440_s12 = sld [smem:[#allocation9 + $0x302]] }
  0x58   : > { %s1442_s4 = sld [smem:[#allocation9 + $0x3]] }
  0x59   : > { %s1444_s10 = sld [smem:[#allocation9 + $0x83]] }
  0x5a   : > { %1961 = sst [smem:[#allocation35_spill]] %s1434_s9 }
  0x5b   : > { %1962 = sst [smem:[#allocation36_spill]] %s1436_s21 }
  0x5c   : > { %1963 = sst [smem:[#allocation37_spill]] %s1438_s2 }
  0x5d   : > { %1964 = sst [smem:[#allocation38_spill]] %s1440_s12 }
  0x5e   : > { %s1446_s14 = sld [smem:[#allocation9 + $0x103]] }
  0x5f   : > { %1965 = sst [smem:[#allocation39_spill]] %s1444_s10 }
  0x60   : > { %s1449_s9 = sld [smem:[#allocation9 + $0x183]] }
  0x61   : > { %s1452_s12 = sld [smem:[#allocation9 + $0x203]] }
  0x62   : > { %s1455_s10 = sld [smem:[#allocation9 + $0x283]] }
  0x63   : > { %s1477_s8 = sld [smem:[#allocation9 + $0x185]] }
  0x64   : > { %1966 = sst [smem:[#allocation40_spill]] %s1446_s14 }
  0x65   : > { %s1459_s14 = sld [smem:[#allocation9 + $0x303]] }
  0x66   : > { %1967 = sst [smem:[#allocation41_spill]] %s1449_s9 }
  0x67   : > { %1968 = sst [smem:[#allocation42_spill]] %s1452_s12 }
  0x68   : > { %1969 = sst [smem:[#allocation43_spill]] %s1455_s10 }
  0x69   : > { %s1461_s9 = sld [smem:[#allocation9 + $0x85]] }
  0x6a   : > { %s1467_s12 = sld [smem:[#allocation9 + $0x105]] }
  0x6b   : > { %1970 = sst [smem:[#allocation44_spill]] %s1459_s14 }
  0x6c   : > { %s1479_s15 = sld [smem:[#allocation9 + $0x205]] }
  0x6d   : > { %s1492_s16 = sld [smem:[#allocation9 + $0x285]] }
  0x6e   : > { %s1503_s23 = sld [smem:[#allocation9 + $0x305]] }
  0x6f   : > { %s1516_s24 = sld [smem:[#allocation9 + $0x86]] }
  0x70   : > { %s1974_s25 = sld [smem:[#allocation33_spill]] }
  0x71   : > { %s1975_s3 = sld [smem:[#allocation34_spill]] }
  0x72   : > { %s1522_s30 = sld [smem:[#allocation9 + $0x106]] }
  0x73   : > { %1971 = sst [smem:[#allocation45_spill]] %s1492_s16 }
  0x74   : > { %1972 = sst [smem:[#allocation46_spill]] %s1503_s23 }
  0x75   : > { %1973 = sst [smem:[#allocation47_spill]] %s1516_s24 }
  0x76   : > { %s1976_s23 = sld [smem:[#allocation35_spill]] }
  0x77   : > { %s1528_s24 = sld [smem:[#allocation9 + $0x186]] }
  0x78   : > { %s1986_s10 = sld [smem:[#allocation31_spill]] }
  0x79   : > { %s1989_s16 = sld [smem:[#allocation36_spill]] }
  0x7a   : > { %s1990_s17 = sld [smem:[#allocation37_spill]] }
  0x7b   : > { %s2002_s5 = sld [smem:[#allocation45_spill]] }
  0x7c   : > { %s2003_s18 = sld [smem:[#allocation46_spill]] }
  0xb8   : > { %v244_v30 = vpop.permute.xlu0 %243 }
  0xb9   : > { %250 = vst.msk [vmem:[#allocation3 + $0x3] sm:$0xff] %vm249_vm3, %v244_v30 }
  0xc0   : > { %v252_v31 = vld [vmem:[#allocation3] sm:$0xff]  ;;  %v246_v32 = vpop.permute.xlu0 %245 }
  0xc1   : > { %255 = vst.msk [vmem:[#allocation4] sm:$0xff] %vm204_vm0, %v252_v31  ;;  %322 = vrot.lane.b32.xlu1 %v252_v31, %s1223_s20  ;;  %265 = vrot.lane.b32.xlu2 %v252_v31, %s1224_s26 }
  0xc2   : > { %251 = vst.msk [vmem:[#allocation3 + $0xb] sm:$0xff] %vm249_vm3, %v246_v32  ;;  %v1917_v32 = vstv %s1413_s0 }
  0xc8   : > { %v373_v49 = vld [vmem:[#allocation4] sm:$0xff] }
  0xc9   : > { %v253_v33 = vld [vmem:[#allocation3 + $0x8] sm:$0xff]  ;;  %v261_v34 = vld [vmem:[#allocation3 + $0x10] sm:$0x3f]  ;;  %v1471_v4 = vmul.f32 %v376_v51, %v373_v49  ;;  %v1926_v49 = vstv %s1431_s22 }
  0xca   : > { %256 = vst.msk [vmem:[#allocation4 + $0x8] sm:$0xff] %vm204_vm0, %v253_v33  ;;  %324 = vrot.lane.b32.xlu1 %v253_v33, %s1223_s20  ;;  %269 = vrot.lane.b32.xlu0 %v261_v34, %s1224_s26  ;;  %v254_v35 = vld [vmem:[#allocation3 + $0x10] sm:$0x3f] }
  0xcb   : > { %267 = vrot.lane.b32.xlu2 %v253_v33, %s1224_s26  ;;  %258 = vst.msk [vmem:[#allocation4 + $0x10] sm:$0x3f] %vm257_vm4, %v254_v35  ;;  %v280_v36 = vld [vmem:[#allocation3 + $0x10] sm:$0x3f]  ;;  %s1403_s26 = sld [smem:[#allocation9 + $0x281]] }
  0xcc   : > { %v299_v37 = vld [vmem:[#allocation3 + $0x10] sm:$0x3f] }
  0xcd   : > { %v337_v38 = vld [vmem:[#allocation3 + $0x10] sm:$0x3f] }
  0xce   : > { %v318_v39 = vld [vmem:[#allocation3 + $0x10] sm:$0x3f] }
  0xcf   : > { %v356_v40 = vld [vmem:[#allocation3 + $0x10] sm:$0x3f] }
  0xd1   : > { %1953 = sst [smem:[#allocation27_spill]] %s1403_s26  ;;  %v374_v50 = vld [vmem:[#allocation4 + $0x8] sm:$0xff]  ;;  %v1907_v27 = vstv %s1403_s26 }
  0xd2   : > { %284 = vrot.lane.b32.xlu1 %v252_v31, %s1225_s27  ;;  %303 = vrot.lane.b32.xlu0 %v252_v31, %s1226_s29  ;;  %v429_v53 = vld [vmem:[#allocation4 + $0x1] sm:$0xff]  ;;  %v430_v56 = vld [vmem:[#allocation4 + $0x9] sm:$0xff]  ;;  %v1473_v5 = vmul.f32 %v376_v51, %v374_v50  ;;  %v1924_v50 = vstv %s1976_s23  ;;  %v1923_v51 = vstv %s1436_s21  ;;  %s1981_s21 = sld [smem:[#allocation42_spill]] }
  0xd3   : > { %286 = vrot.lane.b32.xlu2 %v253_v33, %s1225_s27  ;;  %v485_v54 = vld [vmem:[#allocation4 + $0x2] sm:$0xff]  ;;  %v486_v63 = vld [vmem:[#allocation4 + $0xa] sm:$0xff]  ;;  %v1475_v6 = vmul.f32 %v432_v52, %v429_v53  ;;  %v1490_v16 = vmul.f32 %v432_v52, %v430_v56  ;;  %v1922_v52 = vstv %s1438_s2  ;;  %v400_v56 = vstv %s1442_s4  ;;  %s1980_s2 = sld [smem:[#allocation41_spill]] }
  0xd4   : > { %v541_v55 = vld [vmem:[#allocation4 + $0x3] sm:$0xff]  ;;  %v542_v0 = vld [vmem:[#allocation4 + $0xb] sm:$0xff]  ;;  %v1481_v11 = vmul.f32 %v488_v57, %v485_v54  ;;  %v1494_v17 = vmul.f32 %v488_v57, %v486_v63  ;;  %s1983_s26 = sld [smem:[#allocation47_spill]] }
  0xd5   : > { %v597_v61 = vld [vmem:[#allocation4 + $0x4] sm:$0xff]  ;;  %v598_v1 = vld [vmem:[#allocation4 + $0xc] sm:$0xff]  ;;  %v1483_v12 = vmul.f32 %v544_v58, %v541_v55  ;;  %v1496_v18 = vmul.f32 %v544_v58, %v542_v0  ;;  %s2000_s4 = sld [smem:[#allocation44_spill]] }
  0xd6   : > { %v653_v62 = vld [vmem:[#allocation4 + $0x5] sm:$0xff]  ;;  %v654_v7 = vld [vmem:[#allocation4 + $0xd] sm:$0xff]  ;;  %v1485_v13 = vmul.f32 %v600_v59, %v597_v61  ;;  %v1498_v19 = vmul.f32 %v600_v59, %v598_v1 }
  0xd7   : > { %v709_v8 = vld [vmem:[#allocation4 + $0x6] sm:$0xff]  ;;  %v1487_v14 = vmul.f32 %v656_v60, %v653_v62  ;;  %v1505_v22 = vmul.f32 %v656_v60, %v654_v7 }
  0xd8   : > { %v1509_v23 = vmul.f32 %v1905_v2, %v709_v8 }
  0xda   : > { %305 = vrot.lane.b32.xlu1 %v253_v33, %s1226_s29  ;;  %343 = vrot.lane.b32.xlu0 %v253_v33, %s1227_s6 }
  0xdb   : > { %341 = vrot.lane.b32.xlu2 %v252_v31, %s1227_s6 }
  0xe2   : > { %360 = vrot.lane.b32.xlu1 %v252_v31, %s1228_s7  ;;  %288 = vrot.lane.b32.xlu0 %v280_v36, %s1225_s27  ;;  %s1405_s27 = sld [smem:[#allocation9 + $0x301]]  ;;  %v520_v36 = vstv %s1416_s1 }
  0xe3   : > { %362 = vrot.lane.b32.xlu2 %v253_v33, %s1228_s7  ;;  %s1535_s1 = sld [smem:[#allocation9 + $0x206]] }
  0xe8   : > { %1954 = sst [smem:[#allocation28_spill]] %s1405_s27  ;;  %v1906_v28 = vstv %s1405_s27 }
  0xe9   : > { %s1988_s27 = sld [smem:[#allocation34_spill]] }
  0xea   : > { %307 = vrot.lane.b32.xlu1 %v299_v37, %s1226_s29  ;;  %345 = vrot.lane.b32.xlu0 %v337_v38, %s1227_s6  ;;  %s1407_s29 = sld [smem:[#allocation9 + $0x2]]  ;;  %v576_v37 = vstv %s1418_s28  ;;  %v632_v38 = vstv %s1420_s13 }
  0xeb   : > { %326 = vrot.lane.b32.xlu2 %v318_v39, %s1223_s20  ;;  %s1401_s20 = sld [smem:[#allocation9 + $0x201]]  ;;  %v1918_v39 = vstv %s1422_s19 }
  0xec   : > { %s1409_s6 = sld [smem:[#allocation9 + $0x4]] }
  0xed   : > { %s1541_s19 = sld [smem:[#allocation9 + $0x286]] }
  0xee   : > { %s1549_s13 = sld [smem:[#allocation9 + $0x306]] }
  0xf0   : > { %v392_v29 = vstv %s1407_s29 }
  0xf1   : > { %1952 = sst [smem:[#allocation26_spill]] %s1401_s20  ;;  %v1908_v26 = vstv %s1401_s20 }
  0xf2   : > { %364 = vrot.lane.b32.xlu1 %v356_v40, %s1228_s7  ;;  %s1411_s7 = sld [smem:[#allocation9 + $0x5]]  ;;  %v408_v30 = vstv %s1409_s6 }
  0xf3   : > { %s1977_s6 = sld [smem:[#allocation38_spill]] }
  0xf8   : > { %v1914_v31 = vstv %s1411_s7 }
  0xf9   : > { %v1921_v55 = vstv %s1977_s6 }
 0x11b   : > { %v266_v41 = vpop.permute.xlu2 %265 }
 0x11c   : > { %275 = vst.msk [vmem:[#allocation4 + $0x18] sm:$0xff] %vm204_vm0, %v266_v41 }
 0x123   : > { %v381_v24 = vld [vmem:[#allocation4 + $0x18] sm:$0xff] }
 0x124   : > { %v1530_v40 = vmul.f32 %v384_v3, %v381_v24 }
 0x125   : > { %v268_v42 = vpop.permute.xlu2 %267 }
 0x126   : > { %276 = vst.msk [vmem:[#allocation4 + $0x20] sm:$0xff] %vm204_vm0, %v268_v42 }
 0x12d   : > { %v287_v43 = vpop.permute.xlu2 %286  ;;  %v382_v33 = vld [vmem:[#allocation4 + $0x20] sm:$0xff] }
 0x12e   : > { %295 = vst.msk [vmem:[#allocation4 + $0x38] sm:$0xff] %vm204_vm0, %v287_v43  ;;  %v437_v34 = vld [vmem:[#allocation4 + $0x19] sm:$0xff]  ;;  %v1543_v53 = vmul.f32 %v384_v3, %v382_v33 }
 0x12f   : > { %v493_v35 = vld [vmem:[#allocation4 + $0x1a] sm:$0xff]  ;;  %v441_v54 = vmul.f32 %v440_v20, %v437_v34 }
 0x130   : > { %v549_v41 = vld [vmem:[#allocation4 + $0x1b] sm:$0xff]  ;;  %v1553_v59 = vmul.f32 %v496_v21, %v493_v35 }
 0x131   : > { %v605_v42 = vld [vmem:[#allocation4 + $0x1c] sm:$0xff]  ;;  %v1557_v60 = vmul.f32 %v552_v25, %v549_v41 }
 0x132   : > { %v1561_v61 = vmul.f32 %v1908_v26, %v605_v42 }
 0x133   : > { %v323_v44 = vpop.permute.xlu1 %322 }
 0x134   : > { %332 = vst.msk [vmem:[#allocation4 + $0x60] sm:$0xff] %vm204_vm0, %v323_v44  ;;  %v1919_v44 = vstv %s1424_s11  ;;  %s1979_s11 = sld [smem:[#allocation40_spill]] }
 0x135   : > { %v342_v45 = vpop.permute.xlu2 %341  ;;  %v390_v62 = vld [vmem:[#allocation4 + $0x38] sm:$0xff] }
 0x136   : > { %351 = vst.msk [vmem:[#allocation4 + $0x78] sm:$0xff] %vm204_vm0, %v342_v45  ;;  %v424_v45 = vstv %s1974_s25  ;;  %v394_v41 = vmul.f32 %v392_v29, %v390_v62  ;;  %v1997_v62 = vstv %s1528_s24 }
 0x13b   : > { %v405_v43 = vld [vmem:[#allocation4 + $0x60] sm:$0xff] }
 0x13c   : > { %v325_v46 = vpop.permute.xlu1 %324  ;;  %v270_v47 = vpop.permute.xlu0 %269  ;;  %v409_v63 = vmul.f32 %v408_v30, %v405_v43  ;;  %v1920_v43 = vstv %s1461_s9 }
 0x13d   : > { %333 = vst.msk [vmem:[#allocation4 + $0x68] sm:$0xff] %vm204_vm0, %v325_v46  ;;  %v363_v48 = vpop.permute.xlu2 %362  ;;  %v1927_v46 = vstv %s1975_s3  ;;  %s1978_s3 = sld [smem:[#allocation39_spill]]  ;;  %v413_v3 = vld [vmem:[#allocation4 + $0x78] sm:$0xff] }
 0x13e   : > { %277 = vst.msk [vmem:[#allocation4 + $0x28] sm:$0x3f] %vm257_vm4, %v270_v47  ;;  %v661_v47 = vld [vmem:[#allocation4 + $0x1d] sm:$0xff] }
 0x13f   : > { %371 = vst.msk [vmem:[#allocation4 + $0x98] sm:$0xff] %vm204_vm0, %v363_v48  ;;  %v717_v48 = vld [vmem:[#allocation4 + $0x1e] sm:$0xff]  ;;  %v1566_v0 = vmul.f32 %v1907_v27, %v661_v47  ;;  %v1925_v47 = vstv %s1467_s12 }
 0x140   : > { %v1570_v1 = vmul.f32 %v1906_v28, %v717_v48  ;;  %v411_v48 = vadd.f32 %v409_v63, %v1471_v4 }
 0x144   : > { %v285_v9 = vpop.permute.xlu1 %284  ;;  %v304_v10 = vpop.permute.xlu0 %303  ;;  %v406_v7 = vld [vmem:[#allocation4 + $0x68] sm:$0xff] }
 0x145   : > { %294 = vst.msk [vmem:[#allocation4 + $0x30] sm:$0xff] %vm204_vm0, %v285_v9  ;;  %v327_v15 = vpop.permute.xlu2 %326  ;;  %v517_v28 = vld [vmem:[#allocation4 + $0x62] sm:$0xff] }
 0x146   : > { %313 = vst.msk [vmem:[#allocation4 + $0x48] sm:$0xff] %vm204_vm0, %v304_v10  ;;  %v422_v27 = vld [vmem:[#allocation4 + $0x98] sm:$0xff]  ;;  %v573_v35 = vld [vmem:[#allocation4 + $0x63] sm:$0xff] }
 0x147   : > { %334 = vst.msk [vmem:[#allocation4 + $0x70] sm:$0x3f] %vm257_vm4, %v327_v15  ;;  %v461_v15 = vld [vmem:[#allocation4 + $0x61] sm:$0xff]  ;;  %v426_v63 = vmul.f32 %v424_v45, %v422_v27 }
 0x148   : > { %v465_v2 = vmul.f32 %v1917_v32, %v461_v15  ;;  %v629_v34 = vld [vmem:[#allocation4 + $0x64] sm:$0xff]  ;;  %v443_v32 = vadd.f32 %v441_v54, %v411_v48 }
 0x149   : > { %v685_v33 = vld [vmem:[#allocation4 + $0x65] sm:$0xff] }
 0x14a   : > { %v550_v27 = vld [vmem:[#allocation4 + $0x23] sm:$0xff] }
 0x14c   : > { %v306_v57 = vpop.permute.xlu1 %305  ;;  %v344_v58 = vpop.permute.xlu0 %343  ;;  %v445_v15 = vld [vmem:[#allocation4 + $0x31] sm:$0xff] }
 0x14d   : > { %314 = vst.msk [vmem:[#allocation4 + $0x50] sm:$0xff] %vm204_vm0, %v306_v57  ;;  %v397_v8 = vld [vmem:[#allocation4 + $0x48] sm:$0xff]  ;;  %v417_v57 = vmul.f32 %v1914_v31, %v413_v3  ;;  %v557_v48 = vld [vmem:[#allocation4 + $0x33] sm:$0xff] }
 0x14e   : > { %352 = vst.msk [vmem:[#allocation4 + $0x80] sm:$0xff] %vm204_vm0, %v344_v58  ;;  %v401_v24 = vmul.f32 %v400_v56, %v397_v8  ;;  %v410_v58 = vmul.f32 %v408_v30, %v406_v7  ;;  %v741_v7 = vld [vmem:[#allocation4 + $0x66] sm:$0xff]  ;;  %v669_v26 = vld [vmem:[#allocation4 + $0x35] sm:$0xff] }
 0x14f   : > { %v419_v4 = vadd.f32 %v417_v57, %v1530_v40  ;;  %v494_v30 = vld [vmem:[#allocation4 + $0x22] sm:$0xff]  ;;  %v1616_v40 = vmul.f32 %v632_v38, %v629_v34  ;;  %v389_v57 = vld [vmem:[#allocation4 + $0x30] sm:$0xff] }
 0x150   : > { %v435_v8 = vadd.f32 %v1475_v6, %v401_v24  ;;  %v438_v6 = vld [vmem:[#allocation4 + $0x21] sm:$0xff]  ;;  %v412_v3 = vadd.f32 %v410_v58, %v1473_v5  ;;  %v1620_v5 = vmul.f32 %v1918_v39, %v685_v33  ;;  %v501_v34 = vld [vmem:[#allocation4 + $0x32] sm:$0xff]  ;;  %v1635_v39 = vmul.f32 %v496_v21, %v494_v30  ;;  %v462_v30 = vld [vmem:[#allocation4 + $0x69] sm:$0xff] }
 0x151   : > { %v725_v31 = vld [vmem:[#allocation4 + $0x36] sm:$0xff]  ;;  %v1648_v21 = vadd.f32 %v426_v63, %v394_v41  ;;  %v1662_v41 = vmul.f32 %v1922_v52, %v669_v26  ;;  %v1994_v52 = vstv %s1522_s30 }
 0x152   : > { %v467_v24 = vadd.f32 %v465_v2, %v435_v8  ;;  %v1608_v2 = vmul.f32 %v520_v36, %v517_v28  ;;  %v1612_v8 = vmul.f32 %v576_v37, %v573_v35  ;;  %v1625_v28 = vmul.f32 %v1919_v44, %v741_v7  ;;  %v518_v44 = vld [vmem:[#allocation4 + $0x6a] sm:$0xff] }
 0x153   : > { %v442_v35 = vmul.f32 %v440_v20, %v438_v6  ;;  %v1666_v63 = vmul.f32 %v1921_v55, %v725_v31  ;;  %v630_v55 = vld [vmem:[#allocation4 + $0x6c] sm:$0xff] }
 0x154   : > { %v361_v42 = vpop.permute.xlu1 %360  ;;  %v289_v10 = vpop.permute.xlu0 %288  ;;  %v398_v9 = vld [vmem:[#allocation4 + $0x50] sm:$0xff]  ;;  %v499_v20 = vadd.f32 %v1553_v59, %v467_v24  ;;  %v505_v59 = vmul.f32 %v1926_v49, %v501_v34  ;;  %v561_v24 = vmul.f32 %v1924_v50, %v557_v48  ;;  %v1672_v48 = vmul.f32 %v520_v36, %v518_v44 }
 0x155   : > { %370 = vst.msk [vmem:[#allocation4 + $0x90] sm:$0xff] %vm204_vm0, %v361_v42  ;;  %v469_v54 = vld [vmem:[#allocation4 + $0x79] sm:$0xff]  ;;  %v449_v42 = vmul.f32 %v1927_v46, %v445_v15  ;;  %v402_v7 = vmul.f32 %v400_v56, %v398_v9  ;;  %v1642_v15 = vadd.f32 %v442_v35, %v412_v3  ;;  %v393_v9 = vmul.f32 %v392_v29, %v389_v57  ;;  %v677_v49 = vld [vmem:[#allocation4 + $0x4d] sm:$0xff] }
 0x156   : > { %296 = vst.msk [vmem:[#allocation4 + $0x40] sm:$0x3f] %vm257_vm4, %v289_v10  ;;  %v473_v33 = vmul.f32 %v1920_v43, %v469_v54  ;;  %v525_v58 = vld [vmem:[#allocation4 + $0x7a] sm:$0xff]  ;;  %v1646_v54 = vmul.f32 %v552_v25, %v550_v27  ;;  %v453_v43 = vld [vmem:[#allocation4 + $0x49] sm:$0xff]  ;;  %v1991_v57 = vstv %s1413_s0  ;;  %s1999_s0 = sld [smem:[#allocation43_spill]] }
 0x157   : > { %v613_v10 = vld [vmem:[#allocation4 + $0x34] sm:$0xff]  ;;  %v529_v6 = vmul.f32 %v1925_v47, %v525_v58  ;;  %v451_v35 = vadd.f32 %v449_v42, %v419_v4  ;;  %v565_v27 = vld [vmem:[#allocation4 + $0x4b] sm:$0xff]  ;;  %v414_v29 = vld [vmem:[#allocation4 + $0x80] sm:$0xff]  ;;  %v466_v34 = vmul.f32 %v1991_v57, %v462_v30  ;;  %v436_v4 = vadd.f32 %v1490_v16, %v402_v7 }
 0x158   : > { %v475_v56 = vadd.f32 %v473_v33, %v443_v32  ;;  %v1658_v25 = vmul.f32 %v1923_v51, %v613_v10  ;;  %v509_v32 = vld [vmem:[#allocation4 + $0x4a] sm:$0xff]  ;;  %v1992_v42 = vstv %s1978_s3  ;;  %v1993_v57 = vstv %s1983_s26 }
 0x159   : > { %v531_v3 = vadd.f32 %v529_v6, %v499_v20  ;;  %v457_v26 = vmul.f32 %v1992_v42, %v453_v43  ;;  %v574_v6 = vld [vmem:[#allocation4 + $0x6b] sm:$0xff]  ;;  %v1995_v43 = vstv %s1979_s11  ;;  %v1996_v42 = vstv %s1980_s2 }
 0x15a   : > { %v507_v44 = vadd.f32 %v505_v59, %v475_v56  ;;  %v513_v7 = vmul.f32 %v1995_v43, %v509_v32  ;;  %v569_v50 = vmul.f32 %v1996_v42, %v565_v27  ;;  %v621_v47 = vld [vmem:[#allocation4 + $0x4c] sm:$0xff]  ;;  %v1998_v59 = vstv %s1411_s7 }
 0x15b   : > { %v563_v46 = vadd.f32 %v561_v24, %v531_v3  ;;  %v733_v56 = vld [vmem:[#allocation4 + $0x4e] sm:$0xff]  ;;  %v1699_v24 = vmul.f32 %v632_v38, %v630_v55  ;;  %v2007_v55 = vstv %s1479_s15 }
 0x15c   : > { %v421_v33 = vld [vmem:[#allocation4 + $0x90] sm:$0xff]  ;;  %v308_v10 = vpop.permute.xlu1 %307  ;;  %v346_v20 = vpop.permute.xlu0 %345 }
 0x15d   : > { %v477_v58 = vld [vmem:[#allocation4 + $0x91] sm:$0xff]  ;;  %v425_v30 = vmul.f32 %v424_v45, %v421_v33  ;;  %315 = vst.msk [vmem:[#allocation4 + $0x58] sm:$0x3f] %vm257_vm4, %v308_v10  ;;  %v581_v33 = vld [vmem:[#allocation4 + $0x7b] sm:$0xff]  ;;  %v1695_v10 = vmul.f32 %v576_v37, %v574_v6  ;;  %v2006_v6 = vstv %s1477_s8 }
 0x15e   : > { %v533_v31 = vld [vmem:[#allocation4 + $0x92] sm:$0xff]  ;;  %v481_v36 = vmul.f32 %v1993_v57, %v477_v58  ;;  %353 = vst.msk [vmem:[#allocation4 + $0x88] sm:$0x3f] %vm257_vm4, %v346_v20  ;;  %v637_v58 = vld [vmem:[#allocation4 + $0x7c] sm:$0xff]  ;;  %v2001_v20 = vstv %s1981_s21  ;;  %v585_v38 = vmul.f32 %v2006_v6, %v581_v33 }
 0x15f   : > { %v537_v51 = vmul.f32 %v1994_v52, %v533_v31  ;;  %v589_v16 = vld [vmem:[#allocation4 + $0x93] sm:$0xff]  ;;  %v418_v52 = vmul.f32 %v1998_v59, %v414_v29  ;;  %v427_v31 = vadd.f32 %v425_v30, %v393_v9  ;;  %v625_v57 = vmul.f32 %v2001_v20, %v621_v47  ;;  %v693_v29 = vld [vmem:[#allocation4 + $0x7d] sm:$0xff] }
 0x160   : > { %v593_v45 = vmul.f32 %v1997_v62, %v589_v16  ;;  %v483_v32 = vadd.f32 %v481_v36, %v451_v35  ;;  %v468_v62 = vadd.f32 %v466_v34, %v436_v4  ;;  %v749_v16 = vld [vmem:[#allocation4 + $0x7e] sm:$0xff]  ;;  %v2004_v30 = vstv %s1999_s0  ;;  %v757_v36 = vld [vmem:[#allocation4 + $0x96] sm:$0xff] }
 0x161   : > { %v539_v27 = vadd.f32 %v537_v51, %v507_v44  ;;  %v459_v43 = vadd.f32 %v457_v26, %v427_v31  ;;  %v1705_v35 = vmul.f32 %v2004_v30, %v677_v49  ;;  %v2005_v51 = vstv %s2000_s4  ;;  %v701_v49 = vld [vmem:[#allocation4 + $0x95] sm:$0xff] }
 0x162   : > { %v595_v3 = vadd.f32 %v593_v45, %v563_v46  ;;  %v515_v42 = vadd.f32 %v513_v7, %v483_v32  ;;  %v1709_v37 = vmul.f32 %v2005_v51, %v733_v56  ;;  %v641_v34 = vmul.f32 %v2007_v55, %v637_v58  ;;  %v645_v46 = vld [vmem:[#allocation4 + $0x94] sm:$0xff]  ;;  %v614_v51 = vld [vmem:[#allocation4 + $0x3c] sm:$0xff] }
 0x163   : > { %v571_v9 = vadd.f32 %v569_v50, %v539_v27  ;;  %v420_v47 = vadd.f32 %v418_v52, %v1543_v53  ;;  %v491_v4 = vadd.f32 %v1481_v11, %v459_v43  ;;  %v446_v44 = vld [vmem:[#allocation4 + $0x39] sm:$0xff]  ;;  %v2008_v7 = vstv %s2002_s5 }
 0x164   : > { %v547_v26 = vadd.f32 %v1483_v12, %v515_v42  ;;  %v697_v45 = vmul.f32 %v2008_v7, %v693_v29  ;;  %v2009_v56 = vstv %s2003_s18  ;;  %v627_v53 = vadd.f32 %v625_v57, %v595_v3  ;;  %v454_v52 = vld [vmem:[#allocation4 + $0x51] sm:$0xff]  ;;  %v365_v33 = vpop.permute.xlu1 %364  ;;  %v502_v31 = vld [vmem:[#allocation4 + $0x3a] sm:$0xff] }
 0x165   : > { %v603_v50 = vadd.f32 %v1485_v13, %v571_v9  ;;  %v1723_v59 = vmul.f32 %v2009_v56, %v749_v16  ;;  %v500_v11 = vadd.f32 %v1635_v39, %v468_v62  ;;  %v523_v12 = vadd.f32 %v1608_v2, %v491_v4  ;;  %372 = vst.msk [vmem:[#allocation4 + $0xa0] sm:$0x3f] %vm257_vm4, %v365_v33  ;;  %v558_v16 = vld [vmem:[#allocation4 + $0x3b] sm:$0xff]  ;;  %v510_v56 = vld [vmem:[#allocation4 + $0x52] sm:$0xff] }
 0x166   : > { %v579_v13 = vadd.f32 %v1612_v8, %v547_v26  ;;  %v2010_v32 = vstv %s1978_s3  ;;  %v2011_v20 = vstv %s1535_s1  ;;  %v2012_v57 = vstv %s1541_s19  ;;  %v526_v43 = vld [vmem:[#allocation4 + $0x82] sm:$0xff] }
 0x167   : > { %v635_v58 = vadd.f32 %v1616_v40, %v603_v50  ;;  %v458_v27 = vmul.f32 %v2010_v32, %v454_v52  ;;  %v649_v3 = vmul.f32 %v2011_v20, %v645_v46  ;;  %v705_v29 = vmul.f32 %v2012_v57, %v701_v49  ;;  %v470_v40 = vld [vmem:[#allocation4 + $0x81] sm:$0xff]  ;;  %v566_v52 = vld [vmem:[#allocation4 + $0x53] sm:$0xff] }
 0x168   : > { %v2013_v39 = vstv %s1549_s13  ;;  %v2014_v2 = vstv %s1988_s27  ;;  %v555_v42 = vadd.f32 %v1557_v60, %v523_v12  ;;  %v611_v9 = vadd.f32 %v1561_v61, %v579_v13 }
 0x169   : > { %v1738_v62 = vmul.f32 %v2013_v39, %v757_v36  ;;  %v450_v8 = vmul.f32 %v2014_v2, %v446_v44  ;;  %v667_v30 = vadd.f32 %v1566_v0, %v635_v58  ;;  %v460_v6 = vadd.f32 %v458_v27, %v1648_v21  ;;  %v582_v21 = vld [vmem:[#allocation4 + $0x83] sm:$0xff] }
 0x16a   : > { %v659_v55 = vadd.f32 %v1487_v14, %v627_v53  ;;  %v2015_v46 = vstv %s1431_s22  ;;  %v2016_v26 = vstv %s1461_s9  ;;  %v2017_v49 = vstv %s1467_s12  ;;  %s2030_s9 = sld [smem:[#allocation27_spill]] }
 0x16b   : > { %v506_v4 = vmul.f32 %v2015_v46, %v502_v31  ;;  %v474_v50 = vmul.f32 %v2016_v26, %v470_v40  ;;  %v530_v36 = vmul.f32 %v2017_v49, %v526_v43  ;;  %v587_v44 = vadd.f32 %v585_v38, %v555_v42  ;;  %v622_v31 = vld [vmem:[#allocation4 + $0x54] sm:$0xff]  ;;  %s2048_s12 = sld [smem:[#allocation24_spill]] }
 0x16c   : > { %v643_v7 = vadd.f32 %v641_v34, %v611_v9  ;;  %v2018_v60 = vstv %s1976_s23  ;;  %v492_v0 = vadd.f32 %v1494_v17, %v460_v6  ;;  %v452_v33 = vadd.f32 %v450_v8, %v420_v47  ;;  %v478_v2 = vld [vmem:[#allocation4 + $0x99] sm:$0xff]  ;;  %v686_v46 = vld [vmem:[#allocation4 + $0x6d] sm:$0xff] }
 0x16d   : > { %v562_v61 = vmul.f32 %v2018_v60, %v558_v16  ;;  %v2019_v14 = vstv %s1989_s16  ;;  %v476_v12 = vadd.f32 %v474_v50, %v1642_v15  ;;  %v532_v13 = vadd.f32 %v530_v36, %v500_v11  ;;  %v534_v15 = vld [vmem:[#allocation4 + $0x9a] sm:$0xff] }
 0x16e   : > { %v618_v53 = vmul.f32 %v2019_v14, %v614_v51  ;;  %v619_v58 = vadd.f32 %v1658_v25, %v587_v44  ;;  %v675_v38 = vadd.f32 %v1662_v41, %v643_v7  ;;  %v699_v34 = vadd.f32 %v697_v45, %v667_v30  ;;  %v590_v11 = vld [vmem:[#allocation4 + $0x9b] sm:$0xff] }
 0x16f   : > { %v524_v17 = vadd.f32 %v1672_v48, %v492_v0  ;;  %v2020_v32 = vstv %s1979_s11  ;;  %v2021_v20 = vstv %s1980_s2  ;;  %v2022_v57 = vstv %s1477_s8  ;;  %v646_v6 = vld [vmem:[#allocation4 + $0x9c] sm:$0xff]  ;;  %s2028_s2 = sld [smem:[#allocation26_spill]] }
 0x170   : > { %v514_v27 = vmul.f32 %v2020_v32, %v510_v56  ;;  %v570_v47 = vmul.f32 %v2021_v20, %v566_v52  ;;  %v586_v39 = vmul.f32 %v2022_v57, %v582_v21  ;;  %v691_v25 = vadd.f32 %v1620_v5, %v659_v55  ;;  %v678_v36 = vld [vmem:[#allocation4 + $0x55] sm:$0xff]  ;;  %s2038_s11 = sld [smem:[#allocation32_spill]] }
 0x171   : > { %v651_v8 = vadd.f32 %v649_v3, %v619_v58  ;;  %v707_v41 = vadd.f32 %v705_v29, %v675_v38  ;;  %v556_v45 = vadd.f32 %v1646_v54, %v524_v17  ;;  %v508_v16 = vadd.f32 %v506_v4, %v476_v12  ;;  %v718_v58 = vld [vmem:[#allocation4 + $0x26] sm:$0xff]  ;;  %v710_v17 = vld [vmem:[#allocation4 + $0xe] sm:$0xff]  ;;  %s934_s14 = sshll.u32 %s2048_s12, 4  ;;  %s812_s7 = scalar_lea.sflag [#allocation7], %s2048_s12 }
 0x172   : > { %v2023_v40 = vstv %s1983_s26  ;;  %v2024_v48 = vstv %s1522_s30  ;;  %v564_v9 = vadd.f32 %v562_v61, %v532_v13  ;;  %v2025_v30 = vstv %s1528_s24  ;;  %s2050_s30 = sld [smem:[#allocation50_spill]] }
 0x173   : > { %v482_v43 = vmul.f32 %v2023_v40, %v478_v2  ;;  %v538_v42 = vmul.f32 %v2024_v48, %v534_v15  ;;  %v594_v51 = vmul.f32 %v2025_v30, %v590_v11  ;;  %v683_v26 = vadd.f32 %v1705_v35, %v651_v8  ;;  %v606_v35 = vld [vmem:[#allocation4 + $0x24] sm:$0xff] }
 0x174   : > { %v731_v5 = vadd.f32 %v1666_v63, %v699_v34  ;;  %v2026_v3 = vstv %s1981_s21  ;;  %v588_v55 = vadd.f32 %v586_v39, %v556_v45  ;;  %v723_v49 = vadd.f32 %v1570_v1, %v691_v25  ;;  %v662_v63 = vld [vmem:[#allocation4 + $0x25] sm:$0xff]  ;;  %s194_s21 = scalar_lea.vmem [#allocation10], %s934_s14 }
 0x175   : > { %v626_v29 = vmul.f32 %v2026_v3, %v622_v31  ;;  %v484_v54 = vadd.f32 %v482_v43, %v452_v33  ;;  %v540_v4 = vadd.f32 %v538_v42, %v508_v16  ;;  %v596_v50 = vadd.f32 %v594_v51, %v564_v9  ;;  %v726_v39 = vld [vmem:[#allocation4 + $0x3e] sm:$0xff]  ;;  %v742_v16 = vld [vmem:[#allocation4 + $0x6e] sm:$0xff]  ;;  %v734_v3 = vld [vmem:[#allocation4 + $0x56] sm:$0xff]  ;;  %s824_s26 = sshll.u32 %s194_s21, 4  ;;  %s825_s26 = int_to_ptr.vmem [resolvable:$true] %s824_s26 }
 0x176   : > { %v620_v44 = vadd.f32 %v618_v53, %v588_v55  ;;  %v2027_v7 = vstv %s1535_s1  ;;  %v715_v61 = vadd.f32 %v1509_v23, %v683_v26  ;;  %v739_v0 = vadd.f32 %v1709_v37, %v707_v41  ;;  %s2032_s1 = sld [smem:[#allocation28_spill]]  ;;  %v702_v26 = vld [vmem:[#allocation4 + $0x9d] sm:$0xff] }
 0x177   : > { %v650_v60 = vmul.f32 %v2027_v7, %v646_v6  ;;  %v2029_v56 = vstv %s1986_s10  ;;  %v516_v21 = vadd.f32 %v514_v27, %v484_v54  ;;  %v572_v33 = vadd.f32 %v570_v47, %v540_v4  ;;  %s2033_s10 = sld [smem:[#allocation25_spill]] }
 0x178   : > { %v690_v52 = vmul.f32 %v2029_v56, %v686_v46  ;;  %v628_v14 = vadd.f32 %v626_v29, %v596_v50  ;;  %v763_v1 = vadd.f32 %v1738_v62, %v731_v5  ;;  %v747_v53 = vadd.f32 %v1625_v28, %v715_v61  ;;  %v638_v28 = vld [vmem:[#allocation4 + $0x84] sm:$0xff]  ;;  %s1149_s24 = scalar_lea.hbm %s2050_s30, 32 }
 0x179   : > { %v652_v12 = vadd.f32 %v650_v60, %v620_v44  ;;  %v755_v13 = vadd.f32 %v1723_v59, %v723_v49  ;;  %v2031_v23 = vstv %s1999_s0  ;;  %v548_v37 = vadd.f32 %v1496_v18, %v516_v21  ;;  %v694_v59 = vld [vmem:[#allocation4 + $0x85] sm:$0xff]  ;;  %v670_v18 = vld [vmem:[#allocation4 + $0x3d] sm:$0xff] }
 0x17a   : > { %v682_v38 = vmul.f32 %v2031_v23, %v678_v36  ;;  %v604_v34 = vadd.f32 %v1498_v19, %v572_v33  ;;  %v660_v31 = vadd.f32 %v1505_v22, %v628_v14  ;;  %v2034_v32 = vstv %s2028_s2  ;;  %v750_v46 = vld [vmem:[#allocation4 + $0x86] sm:$0xff]  ;;  %v758_v36 = vld [vmem:[#allocation4 + $0x9e] sm:$0xff] }
 0x17b   : > { %v610_v27 = vmul.f32 %v2034_v32, %v606_v35  ;;  %v2035_v62 = vstv %s2030_s9  ;;  %v765_v47 = vadd.f32 %v763_v1, %v739_v0  ;;  %v767_v57 = vadd.f32 %v755_v13, %v747_v53 }
 0x17c   : > { %v666_v20 = vmul.f32 %v2035_v62, %v662_v63  ;;  %v580_v19 = vadd.f32 %v1695_v10, %v548_v37  ;;  %v636_v2 = vadd.f32 %v1699_v24, %v604_v34  ;;  %v684_v22 = vadd.f32 %v682_v38, %v652_v12 }
 0x17d   : > { %v692_v15 = vadd.f32 %v690_v52, %v660_v31  ;;  %v2036_v11 = vstv %s2032_s1  ;;  %v2037_v8 = vstv %s2033_s10  ;;  %v769_v45 = vadd.f32 %v767_v57, %v765_v47 }
 0x17e   : > { %v722_v25 = vmul.f32 %v2036_v11, %v718_v58  ;;  %v714_v41 = vmul.f32 %v2037_v8, %v710_v17  ;;  %v2039_v40 = vstv %s1479_s15  ;;  %v2040_v48 = vstv %s2002_s5 }
 0x17f   : > { %v642_v43 = vmul.f32 %v2039_v40, %v638_v28  ;;  %v698_v42 = vmul.f32 %v2040_v48, %v694_v59  ;;  %v612_v9 = vadd.f32 %v610_v27, %v580_v19  ;;  %v668_v30 = vadd.f32 %v666_v20, %v636_v2 }
 0x180   : > { %v2041_v51 = vstv %s1990_s17  ;;  %v2042_v24 = vstv %s1977_s6  ;;  %v771_v5 = vsub.f32 0.0, %v769_v45  ;;  %v716_v54 = vadd.f32 %v714_v41, %v684_v22 }
 0x181   : > { %v674_v10 = vmul.f32 %v2041_v51, %v670_v18  ;;  %v730_v6 = vmul.f32 %v2042_v24, %v726_v39  ;;  %v644_v29 = vadd.f32 %v642_v43, %v612_v9  ;;  %v700_v55 = vadd.f32 %v698_v42, %v668_v30 }
 0x182   : > { %v724_v4 = vadd.f32 %v722_v25, %v692_v15  ;;  %v2043_v50 = vstv %s2038_s11  ;;  %v773_v44 = vmul.f32 1.442695, %v771_v5  ;;  %v2044_v7 = vstv %s2003_s18 }
 0x183   : > { %v746_v49 = vmul.f32 %v2043_v50, %v742_v16  ;;  %v754_v60 = vmul.f32 %v2044_v7, %v750_v46  ;;  %v676_v61 = vadd.f32 %v674_v10, %v644_v29  ;;  %v2045_v0 = vstv %s1541_s19 }
 0x184   : > { %v706_v35 = vmul.f32 %v2045_v0, %v702_v26  ;;  %v732_v63 = vadd.f32 %v730_v6, %v700_v55  ;;  %v2046_v56 = vstv %s2000_s4  ;;  %1076 = vpow2.f32 %v773_v44 }
 0x185   : > { %v738_v52 = vmul.f32 %v2046_v56, %v734_v3  ;;  %v2047_v33 = vstv %s1549_s13  ;;  %v748_v1 = vadd.f32 %v746_v49, %v716_v54  ;;  %v756_v12 = vadd.f32 %v754_v60, %v724_v4  ;;  %s2049_s13 = sld [smem:[#allocation17_spill]] }
 0x186   : > { %v708_v21 = vadd.f32 %v706_v35, %v676_v61  ;;  %v762_v14 = vmul.f32 %v2047_v33, %v758_v36 }
 0x187   : > { %v768_v23 = vadd.f32 %v756_v12, %v748_v1 }
 0x188   : > { %v764_v53 = vadd.f32 %v762_v14, %v732_v63  ;;  %v740_v13 = vadd.f32 %v738_v52, %v708_v21 }
 0x18a   : > { %v766_v58 = vadd.f32 %v764_v53, %v740_v13  ;;  %v1077_v38 = vpop.eup %1076 }
 0x18b   : > { %v777_v34 = vadd.f32 1.0, %v1077_v38  ;;  %s989_s22 = sshll.u32 %s2049_s13, 4 }
 0x18c   : > { %v770_v37 = vadd.f32 %v768_v23, %v766_v58  ;;  %s823_s20 = scalar_lea.hbm %s2050_s30, %s989_s22 }
 0x18d   : > { %1078 = vrcp.f32 %v777_v34  ;;  %v790_v28 = vand.u32 2147483648, %v777_v34  ;;  %v788_v57 = vand.u32 2147483647, %v777_v34  ;;  %vm784_vm6 = vweird.f32 %v777_v34  ;;  %s826_s27 = sshll.u32 %s823_s20, 4  ;;  %s827_s27 = int_to_ptr.hbm [resolvable:$true] %s826_s27 }
 0x18e   : > { %v772_v31 = vsub.f32 0.0, %v770_v37  ;;  %s1143_s8 = sshra.s32 %s827_s27, 4  ;;  %s1144_s8 = int_to_ptr.hbm [resolvable:$true] %s1143_s8 }
 0x18f   : > { %v791_v39 = vor.u32 1.1754944e-38, %v790_v28  ;;  %vm789_vm8 = vcmp.eq.f32.partialorder %v788_v57, 8.507059e+37  ;;  %s1145_s15 = scalar_lea.hbm %s1144_s8, 16  ;;  %p1150_p11 = scmp.lt.s32.totalorder %s1144_s8, %s2050_s30 }
 0x190   : > { %v775_v17 = vmul.f32 1.442695, %v772_v31  ;;  %p1146_p3 = scmp.ne.s32.totalorder %s1144_s8, %s1145_s15  ;;  %p1151_p12 = scmp.lt.s32.totalorder %s1149_s24, %s1145_s15 }
 0x192   : > { %1080 = vpow2.f32 %v775_v17  ;;  %p1147_p5 = pnand %p1146_p3, %p1298_p8  ;;  %p1152_p0 = por %p1151_p12, %p1150_p11 }
 0x193   : > { %v1079_v32 = vpop.eup %1078 }
 0x194   : > { %v780_v27 = vmul.f32 %v1079_v32, %v777_v34  ;;  %vm785_vm5 = vweird.f32 %v1079_v32  ;;  %p1148_p7 = pneg %p1147_p5 }
 0x195   : > { %vm786_vm7 = vmor %vm784_vm6, %vm785_vm5 }
 0x196   : > { %v781_v62 = vsub.f32 1.0, %v780_v27  ;;  %p1153_p1 = pnand %p1152_p0, %p1148_p7 }
 0x198   : > { %v1081_v20 = vpop.eup %1080  ;;  %v782_v47 = vmul.f32 %v1079_v32, %v781_v62 }
 0x199   : > { %v778_v59 = vadd.f32 1.0, %v1081_v20 }
 0x19a   : > { %v783_v18 = vadd.f32 %v1079_v32, %v782_v47 }
 0x19b   : > { %1082 = vrcp.f32 %v778_v59  ;;  %v805_v25 = vand.u32 2147483648, %v778_v59  ;;  %v803_v41 = vand.u32 2147483647, %v778_v59  ;;  %vm799_vm10 = vweird.f32 %v778_v59 }
 0x19c   : > { %v787_v19 = vsel %vm786_vm7, %v1079_v32, %v783_v18 }
 0x19d   : > { %v792_v2 = vsel %vm789_vm8, %v791_v39, %v787_v19  ;;  %v806_v16 = vor.u32 1.1754944e-38, %v805_v25  ;;  %vm804_vm12 = vcmp.eq.f32.partialorder %v803_v41, 8.507059e+37 }
 0x19e   : > { %809 = vst.msk [vmem:[%s194_s21] sm:$0xff] %vm204_vm0, %v792_v2 }
 0x1a1   : > { %v1083_v22 = vpop.eup %1082 }
 0x1a2   : > { %v795_v15 = vmul.f32 %v1083_v22, %v778_v59  ;;  %vm800_vm9 = vweird.f32 %v1083_v22 }
 0x1a3   : > { %vm801_vm11 = vmor %vm799_vm10, %vm800_vm9 }
 0x1a4   : > { %v796_v11 = vsub.f32 1.0, %v795_v15 }
 0x1a6   : > { %v797_v8 = vmul.f32 %v1083_v22, %v796_v11 }
 0x1a8   : > { %v798_v45 = vadd.f32 %v1083_v22, %v797_v8 }
 0x1aa   : > { %v802_v40 = vsel %vm801_vm11, %v1083_v22, %v798_v45 }
 0x1ab   : > { %v807_v43 = vsel %vm804_vm12, %v806_v16, %v802_v40 }
 0x1ac   : > { %810 = vst.msk [vmem:[%s194_s21 + $0x8] sm:$0xff] %vm204_vm0, %v807_v43 }
 0x1ad   : > { %1156 = shalt.err (!%p1153_p1)
}
 0x1ae   : > { %s1229_s6 = smov 128   ;;  %s1230_s17 = smov 8  }
 0x1af   : > { %996 = dma.vmem_to_hbm [thread:$0]  (%p1298_p8), %s825_s26, 256, %s827_s27, %s812_s7, %s1229_s6, %s1229_s6, %s1230_s17  }
 0x1b0 PF: > { %s2052_s0 = sld [smem:[#allocation14_spill]]  ;;  %p1007_p2 = pnand %p927_p13, %p1302_p9 }
 0x1b1   : > { %s2054_s5 = sld [smem:[#allocation19_spill]] }
 0x1b2   : > { %p1008_p4 = pneg %p1007_p2 }
 0x1b6   : > { %s841_s18 = sand.u32 1, %s2052_s0  }
 0x1b7   : > { %s842_s2 = scalar_lea.sflag [#allocation7], %s841_s18 }
 0x1b8   : > { %1190 = dma.done.wait (%p1008_p4), %s842_s2, 256  }
 0x1b9   : > { %1192 = vsyncadd (%p1008_p4), %s842_s2, 4294967040  ;;  %s19_s14 = sadd.s32 1, %s2054_s5   ;;  %s2055_s9 = sld [smem:[#allocation15_spill]] }
 0x1ba   : > { %p16_p6 = scmp.ge.s32.totalorder %s19_s14, 4   ;;  %s2056_s10 = sld [smem:[#allocation16_spill]] }
 0x1bb   : > { %s2057_s11 = sld [smem:[#allocation23_spill]] }
 0x1bc   : > { %s2058_s12 = sld [smem:[#allocation18_spill]]  ;;  %18 = sbr.rel (!%p16_p6) target bundleno = 11 (0xb), region = 92 }
 0x1bd   : > { %s2059_s13 = sld [smem:[#allocation22_spill]] }
 0x1c1   :  { %848 = vsyncpa [#allocation6], 1 }
 0x1c2   :  { %850 = vsyncpa [#allocation6 + $0x1], 1 }
 0x1c3   :  { %851 = vsyncpa [#allocation7], 1 }
 0x1c4   :  { %853 = vsyncpa [#allocation7 + $0x1], 1 }
 0x1c5   :  { %854 = vsyncpa [#allocation8], 1 }
 0x1c6   :  { %856 = vsyncpa [#allocation8 + $0x1], 1 }

</bundles_post_ra>
